<compile_context>
chip_gen: v7x
topology: tpu7x:2x2x1
jax: 0.10.0
libtpu: 0.0.40
codegen_flags: <defaults>
</compile_context>

<pallas_src>
import functools
import math

import jax
import jax.numpy as jnp
from jax.experimental import pallas as pl
from jax.experimental.pallas import tpu as pltpu


def _mha_kernel(xq_ref, xk_ref, xv_ref, mask_ref,
                wq_ref, wk_ref, wv_ref, wo_ref, bo_ref,
                out_ref,
                q_scratch, m_scratch, l_scratch, acc_scratch,
                *, nb, lq, tk, heads, head_dim):
    """One grid step = (one batch block) x (one KV block).

    xq_ref:        [nb*Lq, E] bf16 (batch*seq flattened queries).
    xk_ref/xv_ref: [nb*tk, E] bf16 (current KV block, flattened).
    mask_ref:      [Lq, tk]   bf16 additive mask (already * -1e9).
    w*_ref:        [E, E]     bf16 (x @ W.T form; Wq pre-scaled by 1/sqrt(Dh)).
    bo_ref:        [1, E]     f32  fc_out bias.
    q_scratch:     [nb*Lq, E] bf16 cached Q projection (computed at kv == 0).
    m/l_scratch:   [H, nb, Lq, 1]  f32 online-softmax running max / denom.
    acc_scratch:   [H, nb, Lq, Dh] f32 running P@V accumulator.
    """
    kv = pl.program_id(1)
    embed = heads * head_dim

    @pl.when(kv == 0)
    def _():
        # Fused Q projection (scale already folded into wq_ref), computed once
        # per batch block and cached in VMEM across all KV steps.
        q = jnp.dot(xq_ref[...], wq_ref[...], preferred_element_type=jnp.float32)
        q_scratch[...] = q.astype(jnp.bfloat16)
        m_scratch[...] = jnp.full(m_scratch.shape, -jnp.inf, m_scratch.dtype)
        l_scratch[...] = jnp.zeros(l_scratch.shape, l_scratch.dtype)
        acc_scratch[...] = jnp.zeros(acc_scratch.shape, acc_scratch.dtype)

    # Fused K/V projections for this KV block: [nb*tk, E] @ [E, E],
    # bf16 MXU operands with f32 accumulation.
    k = jnp.dot(xk_ref[...], wk_ref[...],
                preferred_element_type=jnp.float32).astype(jnp.bfloat16)
    v = jnp.dot(xv_ref[...], wv_ref[...],
                preferred_element_type=jnp.float32).astype(jnp.bfloat16)

    q3 = q_scratch[...].reshape(nb, lq, embed)
    k3 = k.reshape(nb, tk, embed)
    v3 = v.reshape(nb, tk, embed)
    add_mask = mask_ref[...].astype(jnp.float32)              # [Lq, tk]

    # Per-head attention math.  Heads are static lane slices of the fused
    # projections; softmax statistics/accumulator are carried across KV blocks
    # (online softmax), all kept in f32.
    for h in range(heads):
        sl = slice(h * head_dim, (h + 1) * head_dim)
        s = jnp.einsum('bqd,bkd->bqk', q3[:, :, sl], k3[:, :, sl],
                       preferred_element_type=jnp.float32)    # [nb, Lq, tk]
        s = s + add_mask                                       # broadcast over batch

        m_prev = m_scratch[h]                                  # [nb, Lq, 1]
        l_prev = l_scratch[h]
        m_new = jnp.maximum(m_prev, jnp.max(s, axis=-1, keepdims=True))
        alpha = jnp.exp(m_prev - m_new)
        p = jnp.exp(s - m_new)
        l_scratch[h] = alpha * l_prev + jnp.sum(p, axis=-1, keepdims=True)
        m_scratch[h] = m_new
        pv = jnp.einsum('bqk,bkd->bqd', p.astype(jnp.bfloat16), v3[:, :, sl],
                        preferred_element_type=jnp.float32)    # [nb, Lq, Dh]
        acc_scratch[h] = alpha * acc_scratch[h] + pv

    @pl.when(kv == pl.num_programs(1) - 1)
    def _():
        # Normalize (EUP approx reciprocal), concat heads back onto the lane
        # axis, single head-fused output projection, bias added exactly once.
        outs = []
        for h in range(heads):
            inv = pl.reciprocal(l_scratch[h], approx=True)
            outs.append((acc_scratch[h] * inv).astype(jnp.bfloat16))
        o = jnp.concatenate(outs, axis=-1).reshape(nb * lq, embed)
        res = jnp.dot(o, wo_ref[...], preferred_element_type=jnp.float32)
        out_ref[...] = (res + bo_ref[...]).astype(out_ref.dtype)


def _pick_kv_tile(lkv, target=512):
    """KV tile: full if short, else the largest 128-multiple <= target dividing Lkv."""
    if lkv <= target:
        return lkv
    for t in range(target, 127, -128):
        if lkv % t == 0:
            return t
    return lkv


def _pick_batch_block(n, lens, rows_target=512):
    """Batch elements per grid step.  Capped at n//2 (for n >= 2) so the
    'parallel' grid axis has >= 2 blocks and both v7x TensorCores get work;
    requires N % nb == 0 and (nb == 1 or seq lens sublane-aligned) so the
    in-kernel [rows, E] <-> [nb, L, E] reshapes are layout-clean."""
    if n <= 1:
        return 1
    lq = max(lens[0], 1)
    nb = max(1, min(n // 2, rows_target // lq))

    def ok(c):
        return n % c == 0 and (c == 1 or all(l % 8 == 0 for l in lens))

    while nb > 1 and not ok(nb):
        nb -= 1
    return nb


def _choose_tiling(n, lq, lkv, kv_target=512, rows_target=512):
    tk = _pick_kv_tile(lkv, kv_target)
    nb = 1 if tk < lkv else _pick_batch_block(n, (lq, lkv), rows_target)

    rows_q_ok = (nb * lq) % 8 == 0 or nb == n
    rows_k_ok = (nb * tk) % 8 == 0 or (nb == n and tk == lkv)
    if not (n % nb == 0 and lkv % tk == 0 and rows_q_ok and rows_k_ok):
        nb, tk = n, lkv          # full blocks are always legal
    return nb, tk


def _vmem_limit_bytes():
    """Per-generation scoped-VMEM budget: ~3/4 of physical per-core VMEM
    (~48 MiB on v7x, ~96 MiB on v5e/v6e), never below the 32 MiB default."""
    try:
        cap = int(getattr(pltpu.get_tpu_info(), "vmem_capacity_bytes",
                          64 * 1024 * 1024))
    except Exception:
        cap = 64 * 1024 * 1024
    return int(max(32 * 1024 * 1024, min(cap * 3 // 4, 100 * 1024 * 1024)))


def multi_head_attention(values, keys, queries, mask, params, heads):
    """values/keys/queries: [N, L, E]; mask: [Lq, Lk] (1 = masked out);
    params: (wq, wk, wv, wo, bo) in PyTorch Linear layout ([out, in])."""
    N, Lq, E = queries.shape
    Lk = keys.shape[1]
    Lv = values.shape[1]
    assert Lk == Lv, "key_len must equal value_len"
    head_dim = E // heads
    assert head_dim * heads == E, "embed_size must be divisible by heads"

    wq, wk, wv, wo, bo = params
    scale = 1.0 / math.sqrt(head_dim)

    # One-time wrapper work: weights pre-transposed into x @ W.T form (no
    # in-kernel transposes), 1/sqrt(Dh) folded into Wq.T, cast bf16 for MXU.
    wqT = (wq.T.astype(jnp.float32) * scale).astype(jnp.bfloat16)   # [E, E]
    wkT = wk.T.astype(jnp.bfloat16)
    wvT = wv.T.astype(jnp.bfloat16)
    woT = wo.T.astype(jnp.bfloat16)
    bo2 = bo.reshape(1, E).astype(jnp.float32)

    # Additive mask precomputed once; stored bf16 to halve VMEM/HBM footprint.
    add_mask = (mask.astype(jnp.float32) * (-1000000000.0)).astype(jnp.bfloat16)

    # Flatten batch*seq so the fused projections see tall [rows, E] tiles.
    xq = queries.reshape(N * Lq, E).astype(jnp.bfloat16)
    xk = keys.reshape(N * Lk, E).astype(jnp.bfloat16)
    xv = values.reshape(N * Lv, E).astype(jnp.bfloat16)

    nb, tk = _choose_tiling(N, Lq, Lk)
    kv_blocks = Lk // tk
    grid = (N // nb, kv_blocks)

    kernel = functools.partial(_mha_kernel, nb=nb, lq=Lq, tk=tk,
                               heads=heads, head_dim=head_dim)

    kv_idx = lambda b, kv: (b * kv_blocks + kv, 0)

    out_flat = pl.pallas_call(
        kernel,
        out_shape=jax.ShapeDtypeStruct((N * Lq, E), queries.dtype),
        grid=grid,
        in_specs=[
            pl.BlockSpec((nb * Lq, E), lambda b, kv: (b, 0)),   # queries (flat)
            pl.BlockSpec((nb * tk, E), kv_idx),                 # keys    (flat, KV-tiled)
            pl.BlockSpec((nb * tk, E), kv_idx),                 # values  (flat, KV-tiled)
            pl.BlockSpec((Lq, tk), lambda b, kv: (0, kv)),      # additive mask (KV-tiled)
            pl.BlockSpec((E, E), lambda b, kv: (0, 0)),         # Wq.T (pre-scaled), resident
            pl.BlockSpec((E, E), lambda b, kv: (0, 0)),         # Wk.T, resident
            pl.BlockSpec((E, E), lambda b, kv: (0, 0)),         # Wv.T, resident
            pl.BlockSpec((E, E), lambda b, kv: (0, 0)),         # Wo.T, resident
            pl.BlockSpec((1, E), lambda b, kv: (0, 0)),         # fc_out bias
        ],
        out_specs=pl.BlockSpec((nb * Lq, E), lambda b, kv: (b, 0)),
        scratch_shapes=[
            pltpu.VMEM((nb * Lq, E), jnp.bfloat16),               # cached Q projection
            pltpu.VMEM((heads, nb, Lq, 1), jnp.float32),          # online-softmax m
            pltpu.VMEM((heads, nb, Lq, 1), jnp.float32),          # online-softmax l
            pltpu.VMEM((heads, nb, Lq, head_dim), jnp.float32),   # P@V accumulator
        ],
        compiler_params=pltpu.CompilerParams(
            dimension_semantics=("parallel", "arbitrary"),
            vmem_limit_bytes=_vmem_limit_bytes()),
    )(xq, xk, xv, add_mask, wqT, wkT, wvT, woT, bo2)

    return out_flat.reshape(N, Lq, E)


def _reference(values, keys, queries, mask, params, heads):
    """Pure-JAX f32 replica of the PyTorch forward, for verification."""
    wq, wk, wv, wo, bo = params
    N, Lq, E = queries.shape
    Dh = E // heads
    q = (queries @ wq.T).reshape(N, Lq, heads, Dh).transpose(0, 2, 1, 3)
    k = (keys @ wk.T).reshape(N, keys.shape[1], heads, Dh).transpose(0, 2, 1, 3)
    v = (values @ wv.T).reshape(N, values.shape[1], heads, Dh).transpose(0, 2, 1, 3)
    logits = jnp.einsum('nhqd,nhkd->nhqk', q, k) / math.sqrt(Dh)
    logits = logits + mask * (-1000000000.0)
    w = jax.nn.softmax(logits, axis=-1)
    attn = jnp.einsum('nhqk,nhkd->nhqd', w, v)
    attn = attn.transpose(0, 2, 1, 3).reshape(N, Lq, E)
    return attn @ wo.T + bo


if __name__ == "__main__":
    N, L, E, H = 2, 8, 32, 4  # batch, seq, embed_size, heads

    key = jax.random.PRNGKey(0)
    ks = jax.random.split(key, 9)
    values = jax.random.normal(ks[0], (N, L, E), jnp.float32)
    keys_in = jax.random.normal(ks[1], (N, L, E), jnp.float32)
    queries = jax.random.normal(ks[2], (N, L, E), jnp.float32)
    # binary mask (1 = masked-out position), broadcast over batch & heads
    mask = (jax.random.uniform(ks[3], (L, L)) > 0.8).astype(jnp.float32)

    # deterministic parameter init (PyTorch Linear convention: [out, in])
    scale = 1.0 / math.sqrt(E)
    wq = jax.random.uniform(ks[4], (E, E), jnp.float32, -scale, scale)
    wk = jax.random.uniform(ks[5], (E, E), jnp.float32, -scale, scale)
    wv = jax.random.uniform(ks[6], (E, E), jnp.float32, -scale, scale)
    wo = jax.random.uniform(ks[7], (E, E), jnp.float32, -scale, scale)
    bo = jax.random.uniform(ks[8], (E,), jnp.float32, -scale, scale)
    params = (wq, wk, wv, wo, bo)

    out = multi_head_attention(values, keys_in, queries, mask, params, H)
    out = jax.block_until_ready(out)

    ref = _reference(values, keys_in, queries, mask, params, H)
    assert out.shape == (N, L, E)
    max_err = float(jnp.max(jnp.abs(out - ref)))
    # bf16 MXU operands (f32 accumulation / f32 online softmax) -> ~1e-3 level
    # deviation from the pure-f32 reference is expected.
    assert jnp.allclose(out, ref, atol=2e-2, rtol=2e-2), (
        f"mismatch vs reference (max abs err {max_err})")

    print("KERNEL_OK")
</pallas_src>

<mosaic_0001>
module attributes {stable_mosaic.version = 11 : i64} {
  func.func @_mha_kernel(%arg0: i32, %arg1: i32, %arg2: memref<8x32xbf16, #tpu.memory_space<vmem>>, %arg3: memref<8x32xbf16, #tpu.memory_space<vmem>>, %arg4: memref<8x32xbf16, #tpu.memory_space<vmem>>, %arg5: memref<8x8xbf16, #tpu.memory_space<vmem>>, %arg6: memref<32x32xbf16, #tpu.memory_space<vmem>>, %arg7: memref<32x32xbf16, #tpu.memory_space<vmem>>, %arg8: memref<32x32xbf16, #tpu.memory_space<vmem>>, %arg9: memref<32x32xbf16, #tpu.memory_space<vmem>>, %arg10: memref<1x32xf32, #tpu.memory_space<vmem>>, %arg11: memref<8x32xf32, #tpu.memory_space<vmem>>, %arg12: memref<8x32xbf16, #tpu.memory_space<vmem>>, %arg13: memref<4x1x8x1xf32, #tpu.memory_space<vmem>>, %arg14: memref<4x1x8x1xf32, #tpu.memory_space<vmem>>, %arg15: memref<4x1x8x8xf32, #tpu.memory_space<vmem>>) attributes {dimension_semantics = [#tpu.dimension_semantics<parallel>, #tpu.dimension_semantics<arbitrary>], iteration_bounds = array<i64: 2, 1>, scalar_prefetch = 0 : i64, scratch_operands = 4 : i64, tpu.core_type = #tpu.core_type<tc>, window_params = [{transform_indices = @transform_0, window_bounds = array<i64: 8, 32>}, {transform_indices = @transform_1, window_bounds = array<i64: 8, 32>}, {transform_indices = @transform_2, window_bounds = array<i64: 8, 32>}, {transform_indices = @transform_3, window_bounds = array<i64: 8, 8>}, {pipeline_mode = #tpu.pipeline_mode<synchronous>, transform_indices = @transform_4, window_bounds = array<i64: 32, 32>}, {pipeline_mode = #tpu.pipeline_mode<synchronous>, transform_indices = @transform_5, window_bounds = array<i64: 32, 32>}, {pipeline_mode = #tpu.pipeline_mode<synchronous>, transform_indices = @transform_6, window_bounds = array<i64: 32, 32>}, {pipeline_mode = #tpu.pipeline_mode<synchronous>, transform_indices = @transform_7, window_bounds = array<i64: 32, 32>}, {pipeline_mode = #tpu.pipeline_mode<synchronous>, transform_indices = @transform_8, window_bounds = array<i64: 1, 32>}, {transform_indices = @transform_9, window_bounds = array<i64: 8, 32>}]} {
    %c0_i32 = arith.constant 0 : i32
    %0 = arith.cmpi eq, %arg1, %c0_i32 : i32
    %1 = arith.extui %0 : i1 to i32
    %c0_i32_0 = arith.constant 0 : i32
    %2 = arith.cmpi ne, %1, %c0_i32_0 : i32
    scf.if %2 {
      %c0_124 = arith.constant 0 : index
      %c0_125 = arith.constant 0 : index
      %172 = vector.load %arg2[%c0_124, %c0_125] : memref<8x32xbf16, #tpu.memory_space<vmem>>, vector<8x32xbf16>
      %c0_126 = arith.constant 0 : index
      %c0_127 = arith.constant 0 : index
      %173 = vector.load %arg6[%c0_126, %c0_127] : memref<32x32xbf16, #tpu.memory_space<vmem>>, vector<32x32xbf16>
      %cst_128 = arith.constant dense<0.000000e+00> : vector<8x32xf32>
      %174 = tpu.matmul %172, %173, %cst_128 {dimension_numbers = #tpu.dot_dimension_numbers<[1], [0], [0], [1], [0, 0, 1, 1], [], []>} : vector<8x32xbf16>, vector<32x32xbf16>, vector<8x32xf32> -> vector<8x32xf32>
      %175 = arith.truncf %174 : vector<8x32xf32> to vector<8x32xbf16>
      %c0_129 = arith.constant 0 : index
      %c0_130 = arith.constant 0 : index
      %176 = vector.load %arg12[%c0_129, %c0_130] : memref<8x32xbf16, #tpu.memory_space<vmem>>, vector<8x32xbf16>
      tpu.vector_store %arg12[%c0_129, %c0_130], %175 {strides = array<i32>} : memref<8x32xbf16, #tpu.memory_space<vmem>>, vector<8x32xbf16>,
      %cst_131 = arith.constant 0xFF800000 : f32
      %177 = vector.broadcast %cst_131 : f32 to vector<4x1x8x1xf32>
      %c0_132 = arith.constant 0 : index
      %c0_133 = arith.constant 0 : index
      %c0_134 = arith.constant 0 : index
      %c0_135 = arith.constant 0 : index
      %178 = vector.load %arg13[%c0_132, %c0_133, %c0_134, %c0_135] : memref<4x1x8x1xf32, #tpu.memory_space<vmem>>, vector<4x1x8x1xf32>
      tpu.vector_store %arg13[%c0_132, %c0_133, %c0_134, %c0_135], %177 {strides = array<i32>} : memref<4x1x8x1xf32, #tpu.memory_space<vmem>>, vector<4x1x8x1xf32>,
      %cst_136 = arith.constant 0.000000e+00 : f32
      %179 = vector.broadcast %cst_136 : f32 to vector<4x1x8x1xf32>
      %c0_137 = arith.constant 0 : index
      %c0_138 = arith.constant 0 : index
      %c0_139 = arith.constant 0 : index
      %c0_140 = arith.constant 0 : index
      %180 = vector.load %arg14[%c0_137, %c0_138, %c0_139, %c0_140] : memref<4x1x8x1xf32, #tpu.memory_space<vmem>>, vector<4x1x8x1xf32>
      tpu.vector_store %arg14[%c0_137, %c0_138, %c0_139, %c0_140], %179 {strides = array<i32>} : memref<4x1x8x1xf32, #tpu.memory_space<vmem>>, vector<4x1x8x1xf32>,
      %cst_141 = arith.constant 0.000000e+00 : f32
      %181 = vector.broadcast %cst_141 : f32 to vector<4x1x8x8xf32>
      %c0_142 = arith.constant 0 : index
      %c0_143 = arith.constant 0 : index
      %c0_144 = arith.constant 0 : index
      %c0_145 = arith.constant 0 : index
      %182 = vector.load %arg15[%c0_142, %c0_143, %c0_144, %c0_145] : memref<4x1x8x8xf32, #tpu.memory_space<vmem>>, vector<4x1x8x8xf32>
      tpu.vector_store %arg15[%c0_142, %c0_143, %c0_144, %c0_145], %181 {strides = array<i32>} : memref<4x1x8x8xf32, #tpu.memory_space<vmem>>, vector<4x1x8x8xf32>,
    } else {
    }
    %c0 = arith.constant 0 : index
    %c0_1 = arith.constant 0 : index
    %3 = vector.load %arg3[%c0, %c0_1] : memref<8x32xbf16, #tpu.memory_space<vmem>>, vector<8x32xbf16>
    %c0_2 = arith.constant 0 : index
    %c0_3 = arith.constant 0 : index
    %4 = vector.load %arg7[%c0_2, %c0_3] : memref<32x32xbf16, #tpu.memory_space<vmem>>, vector<32x32xbf16>
    %cst = arith.constant dense<0.000000e+00> : vector<8x32xf32>
    %5 = tpu.matmul %3, %4, %cst {dimension_numbers = #tpu.dot_dimension_numbers<[1], [0], [0], [1], [0, 0, 1, 1], [], []>} : vector<8x32xbf16>, vector<32x32xbf16>, vector<8x32xf32> -> vector<8x32xf32>
    %6 = arith.truncf %5 : vector<8x32xf32> to vector<8x32xbf16>
    %c0_4 = arith.constant 0 : index
    %c0_5 = arith.constant 0 : index
    %7 = vector.load %arg4[%c0_4, %c0_5] : memref<8x32xbf16, #tpu.memory_space<vmem>>, vector<8x32xbf16>
    %c0_6 = arith.constant 0 : index
    %c0_7 = arith.constant 0 : index
    %8 = vector.load %arg8[%c0_6, %c0_7] : memref<32x32xbf16, #tpu.memory_space<vmem>>, vector<32x32xbf16>
    %cst_8 = arith.constant dense<0.000000e+00> : vector<8x32xf32>
    %9 = tpu.matmul %7, %8, %cst_8 {dimension_numbers = #tpu.dot_dimension_numbers<[1], [0], [0], [1], [0, 0, 1, 1], [], []>} : vector<8x32xbf16>, vector<32x32xbf16>, vector<8x32xf32> -> vector<8x32xf32>
    %10 = arith.truncf %9 : vector<8x32xf32> to vector<8x32xbf16>
    %c0_9 = arith.constant 0 : index
    %c0_10 = arith.constant 0 : index
    %11 = vector.load %arg12[%c0_9, %c0_10] : memref<8x32xbf16, #tpu.memory_space<vmem>>, vector<8x32xbf16>
    %12 = vector.shape_cast %11 : vector<8x32xbf16> to vector<1x8x32xbf16>
    %13 = vector.shape_cast %6 : vector<8x32xbf16> to vector<1x8x32xbf16>
    %14 = vector.shape_cast %10 : vector<8x32xbf16> to vector<1x8x32xbf16>
    %c0_11 = arith.constant 0 : index
    %c0_12 = arith.constant 0 : index
    %15 = vector.load %arg5[%c0_11, %c0_12] : memref<8x8xbf16, #tpu.memory_space<vmem>>, vector<8x8xbf16>
    %16 = arith.extf %15 : vector<8x8xbf16> to vector<8x8xf32>
    %17 = vector.extract_strided_slice %12 {offsets = [0, 0, 0], sizes = [1, 8, 8], strides = [1, 1, 1]} : vector<1x8x32xbf16> to vector<1x8x8xbf16>
    %18 = vector.extract_strided_slice %13 {offsets = [0, 0, 0], sizes = [1, 8, 8], strides = [1, 1, 1]} : vector<1x8x32xbf16> to vector<1x8x8xbf16>
    "tpu.trace_start"() <{level = 10 : i32, message = "bqd,bkd->bqk"}> : () -> ()
    %cst_13 = arith.constant dense<0.000000e+00> : vector<1x8x8xf32>
    %19 = tpu.matmul %17, %18, %cst_13 {dimension_numbers = #tpu.dot_dimension_numbers<[2], [2], [1], [1], [0, 0, 0, 1, 1, 1], [0], [0]>} : vector<1x8x8xbf16>, vector<1x8x8xbf16>, vector<1x8x8xf32> -> vector<1x8x8xf32>
    "tpu.trace_stop"() : () -> ()
    %20 = vector.shape_cast %16 : vector<8x8xf32> to vector<1x8x8xf32>
    %21 = arith.addf %19, %20 : vector<1x8x8xf32>
    %c0_14 = arith.constant 0 : index
    %c0_15 = arith.constant 0 : index
    %c0_16 = arith.constant 0 : index
    %c0_17 = arith.constant 0 : index
    %22 = vector.load %arg13[%c0_14, %c0_15, %c0_16, %c0_17] : memref<4x1x8x1xf32, #tpu.memory_space<vmem>>, vector<1x1x8x1xf32>
    %23 = vector.shape_cast %22 : vector<1x1x8x1xf32> to vector<1x8x1xf32>
    %c0_18 = arith.constant 0 : index
    %c0_19 = arith.constant 0 : index
    %c0_20 = arith.constant 0 : index
    %c0_21 = arith.constant 0 : index
    %24 = vector.load %arg14[%c0_18, %c0_19, %c0_20, %c0_21] : memref<4x1x8x1xf32, #tpu.memory_space<vmem>>, vector<1x1x8x1xf32>
    %25 = vector.shape_cast %24 : vector<1x1x8x1xf32> to vector<1x8x1xf32>
    %cst_22 = arith.constant dense<0xFF800000> : vector<1x8xf32>
    %26 = vector.multi_reduction <maximumf>, %21, %cst_22 [2] : vector<1x8x8xf32> to vector<1x8xf32>
    %27 = vector.shape_cast %26 : vector<1x8xf32> to vector<1x8x1xf32>
    %28 = arith.maximumf %23, %27 : vector<1x8x1xf32>
    %29 = arith.subf %23, %28 : vector<1x8x1xf32>
    %30 = math.exp %29 : vector<1x8x1xf32>
    %31 = vector.broadcast %28 : vector<1x8x1xf32> to vector<1x8x8xf32>
    %32 = arith.subf %21, %31 : vector<1x8x8xf32>
    %33 = math.exp %32 : vector<1x8x8xf32>
    %34 = arith.mulf %30, %25 : vector<1x8x1xf32>
    %cst_23 = arith.constant dense<0.000000e+00> : vector<1x8xf32>
    %35 = vector.multi_reduction <add>, %33, %cst_23 [2] : vector<1x8x8xf32> to vector<1x8xf32>
    %36 = vector.shape_cast %35 : vector<1x8xf32> to vector<1x8x1xf32>
    %37 = arith.addf %34, %36 : vector<1x8x1xf32>
    %c0_24 = arith.constant 0 : index
    %c0_25 = arith.constant 0 : index
    %c0_26 = arith.constant 0 : index
    %c0_27 = arith.constant 0 : index
    %38 = vector.load %arg14[%c0_24, %c0_25, %c0_26, %c0_27] : memref<4x1x8x1xf32, #tpu.memory_space<vmem>>, vector<1x1x8x1xf32>
    %39 = vector.shape_cast %38 : vector<1x1x8x1xf32> to vector<1x8x1xf32>
    %40 = vector.shape_cast %37 : vector<1x8x1xf32> to vector<1x1x8x1xf32>
    tpu.vector_store %arg14[%c0_24, %c0_25, %c0_26, %c0_27], %40 {strides = array<i32>} : memref<4x1x8x1xf32, #tpu.memory_space<vmem>>, vector<1x1x8x1xf32>,
    %c0_28 = arith.constant 0 : index
    %c0_29 = arith.constant 0 : index
    %c0_30 = arith.constant 0 : index
    %c0_31 = arith.constant 0 : index
    %41 = vector.load %arg13[%c0_28, %c0_29, %c0_30, %c0_31] : memref<4x1x8x1xf32, #tpu.memory_space<vmem>>, vector<1x1x8x1xf32>
    %42 = vector.shape_cast %41 : vector<1x1x8x1xf32> to vector<1x8x1xf32>
    %43 = vector.shape_cast %28 : vector<1x8x1xf32> to vector<1x1x8x1xf32>
    tpu.vector_store %arg13[%c0_28, %c0_29, %c0_30, %c0_31], %43 {strides = array<i32>} : memref<4x1x8x1xf32, #tpu.memory_space<vmem>>, vector<1x1x8x1xf32>,
    %44 = arith.truncf %33 : vector<1x8x8xf32> to vector<1x8x8xbf16>
    %45 = vector.extract_strided_slice %14 {offsets = [0, 0, 0], sizes = [1, 8, 8], strides = [1, 1, 1]} : vector<1x8x32xbf16> to vector<1x8x8xbf16>
    "tpu.trace_start"() <{level = 10 : i32, message = "bqk,bkd->bqd"}> : () -> ()
    %cst_32 = arith.constant dense<0.000000e+00> : vector<1x8x8xf32>
    %46 = tpu.matmul %44, %45, %cst_32 {dimension_numbers = #tpu.dot_dimension_numbers<[2], [1], [1], [2], [0, 0, 0, 1, 1, 2], [0], [0]>} : vector<1x8x8xbf16>, vector<1x8x8xbf16>, vector<1x8x8xf32> -> vector<1x8x8xf32>
    "tpu.trace_stop"() : () -> ()
    %c0_33 = arith.constant 0 : index
    %c0_34 = arith.constant 0 : index
    %c0_35 = arith.constant 0 : index
    %c0_36 = arith.constant 0 : index
    %47 = vector.load %arg15[%c0_33, %c0_34, %c0_35, %c0_36] : memref<4x1x8x8xf32, #tpu.memory_space<vmem>>, vector<1x1x8x8xf32>
    %48 = vector.shape_cast %47 : vector<1x1x8x8xf32> to vector<1x8x8xf32>
    %49 = vector.broadcast %30 : vector<1x8x1xf32> to vector<1x8x8xf32>
    %50 = arith.mulf %49, %48 : vector<1x8x8xf32>
    %51 = arith.addf %50, %46 : vector<1x8x8xf32>
    %c0_37 = arith.constant 0 : index
    %c0_38 = arith.constant 0 : index
    %c0_39 = arith.constant 0 : index
    %c0_40 = arith.constant 0 : index
    %52 = vector.load %arg15[%c0_37, %c0_38, %c0_39, %c0_40] : memref<4x1x8x8xf32, #tpu.memory_space<vmem>>, vector<1x1x8x8xf32>
    %53 = vector.shape_cast %52 : vector<1x1x8x8xf32> to vector<1x8x8xf32>
    %54 = vector.shape_cast %51 : vector<1x8x8xf32> to vector<1x1x8x8xf32>
    tpu.vector_store %arg15[%c0_37, %c0_38, %c0_39, %c0_40], %54 {strides = array<i32>} : memref<4x1x8x8xf32, #tpu.memory_space<vmem>>, vector<1x1x8x8xf32>,
    %55 = vector.extract_strided_slice %12 {offsets = [0, 0, 8], sizes = [1, 8, 8], strides = [1, 1, 1]} : vector<1x8x32xbf16> to vector<1x8x8xbf16>
    %56 = vector.extract_strided_slice %13 {offsets = [0, 0, 8], sizes = [1, 8, 8], strides = [1, 1, 1]} : vector<1x8x32xbf16> to vector<1x8x8xbf16>
    "tpu.trace_start"() <{level = 10 : i32, message = "bqd,bkd->bqk"}> : () -> ()
    %cst_41 = arith.constant dense<0.000000e+00> : vector<1x8x8xf32>
    %57 = tpu.matmul %55, %56, %cst_41 {dimension_numbers = #tpu.dot_dimension_numbers<[2], [2], [1], [1], [0, 0, 0, 1, 1, 1], [0], [0]>} : vector<1x8x8xbf16>, vector<1x8x8xbf16>, vector<1x8x8xf32> -> vector<1x8x8xf32>
    "tpu.trace_stop"() : () -> ()
    %58 = vector.shape_cast %16 : vector<8x8xf32> to vector<1x8x8xf32>
    %59 = arith.addf %57, %58 : vector<1x8x8xf32>
    %c1 = arith.constant 1 : index
    %c0_42 = arith.constant 0 : index
    %c0_43 = arith.constant 0 : index
    %c0_44 = arith.constant 0 : index
    %60 = vector.load %arg13[%c1, %c0_42, %c0_43, %c0_44] : memref<4x1x8x1xf32, #tpu.memory_space<vmem>>, vector<1x1x8x1xf32>
    %61 = vector.shape_cast %60 : vector<1x1x8x1xf32> to vector<1x8x1xf32>
    %c1_45 = arith.constant 1 : index
    %c0_46 = arith.constant 0 : index
    %c0_47 = arith.constant 0 : index
    %c0_48 = arith.constant 0 : index
    %62 = vector.load %arg14[%c1_45, %c0_46, %c0_47, %c0_48] : memref<4x1x8x1xf32, #tpu.memory_space<vmem>>, vector<1x1x8x1xf32>
    %63 = vector.shape_cast %62 : vector<1x1x8x1xf32> to vector<1x8x1xf32>
    %cst_49 = arith.constant dense<0xFF800000> : vector<1x8xf32>
    %64 = vector.multi_reduction <maximumf>, %59, %cst_49 [2] : vector<1x8x8xf32> to vector<1x8xf32>
    %65 = vector.shape_cast %64 : vector<1x8xf32> to vector<1x8x1xf32>
    %66 = arith.maximumf %61, %65 : vector<1x8x1xf32>
    %67 = arith.subf %61, %66 : vector<1x8x1xf32>
    %68 = math.exp %67 : vector<1x8x1xf32>
    %69 = vector.broadcast %66 : vector<1x8x1xf32> to vector<1x8x8xf32>
    %70 = arith.subf %59, %69 : vector<1x8x8xf32>
    %71 = math.exp %70 : vector<1x8x8xf32>
    %72 = arith.mulf %68, %63 : vector<1x8x1xf32>
    %cst_50 = arith.constant dense<0.000000e+00> : vector<1x8xf32>
    %73 = vector.multi_reduction <add>, %71, %cst_50 [2] : vector<1x8x8xf32> to vector<1x8xf32>
    %74 = vector.shape_cast %73 : vector<1x8xf32> to vector<1x8x1xf32>
    %75 = arith.addf %72, %74 : vector<1x8x1xf32>
    %c1_51 = arith.constant 1 : index
    %c0_52 = arith.constant 0 : index
    %c0_53 = arith.constant 0 : index
    %c0_54 = arith.constant 0 : index
    %76 = vector.load %arg14[%c1_51, %c0_52, %c0_53, %c0_54] : memref<4x1x8x1xf32, #tpu.memory_space<vmem>>, vector<1x1x8x1xf32>
    %77 = vector.shape_cast %76 : vector<1x1x8x1xf32> to vector<1x8x1xf32>
    %78 = vector.shape_cast %75 : vector<1x8x1xf32> to vector<1x1x8x1xf32>
    tpu.vector_store %arg14[%c1_51, %c0_52, %c0_53, %c0_54], %78 {strides = array<i32>} : memref<4x1x8x1xf32, #tpu.memory_space<vmem>>, vector<1x1x8x1xf32>,
    %c1_55 = arith.constant 1 : index
    %c0_56 = arith.constant 0 : index
    %c0_57 = arith.constant 0 : index
    %c0_58 = arith.constant 0 : index
    %79 = vector.load %arg13[%c1_55, %c0_56, %c0_57, %c0_58] : memref<4x1x8x1xf32, #tpu.memory_space<vmem>>, vector<1x1x8x1xf32>
    %80 = vector.shape_cast %79 : vector<1x1x8x1xf32> to vector<1x8x1xf32>
    %81 = vector.shape_cast %66 : vector<1x8x1xf32> to vector<1x1x8x1xf32>
    tpu.vector_store %arg13[%c1_55, %c0_56, %c0_57, %c0_58], %81 {strides = array<i32>} : memref<4x1x8x1xf32, #tpu.memory_space<vmem>>, vector<1x1x8x1xf32>,
    %82 = arith.truncf %71 : vector<1x8x8xf32> to vector<1x8x8xbf16>
    %83 = vector.extract_strided_slice %14 {offsets = [0, 0, 8], sizes = [1, 8, 8], strides = [1, 1, 1]} : vector<1x8x32xbf16> to vector<1x8x8xbf16>
    "tpu.trace_start"() <{level = 10 : i32, message = "bqk,bkd->bqd"}> : () -> ()
    %cst_59 = arith.constant dense<0.000000e+00> : vector<1x8x8xf32>
    %84 = tpu.matmul %82, %83, %cst_59 {dimension_numbers = #tpu.dot_dimension_numbers<[2], [1], [1], [2], [0, 0, 0, 1, 1, 2], [0], [0]>} : vector<1x8x8xbf16>, vector<1x8x8xbf16>, vector<1x8x8xf32> -> vector<1x8x8xf32>
    "tpu.trace_stop"() : () -> ()
    %c1_60 = arith.constant 1 : index
    %c0_61 = arith.constant 0 : index
    %c0_62 = arith.constant 0 : index
    %c0_63 = arith.constant 0 : index
    %85 = vector.load %arg15[%c1_60, %c0_61, %c0_62, %c0_63] : memref<4x1x8x8xf32, #tpu.memory_space<vmem>>, vector<1x1x8x8xf32>
    %86 = vector.shape_cast %85 : vector<1x1x8x8xf32> to vector<1x8x8xf32>
    %87 = vector.broadcast %68 : vector<1x8x1xf32> to vector<1x8x8xf32>
    %88 = arith.mulf %87, %86 : vector<1x8x8xf32>
    %89 = arith.addf %88, %84 : vector<1x8x8xf32>
    %c1_64 = arith.constant 1 : index
    %c0_65 = arith.constant 0 : index
    %c0_66 = arith.constant 0 : index
    %c0_67 = arith.constant 0 : index
    %90 = vector.load %arg15[%c1_64, %c0_65, %c0_66, %c0_67] : memref<4x1x8x8xf32, #tpu.memory_space<vmem>>, vector<1x1x8x8xf32>
    %91 = vector.shape_cast %90 : vector<1x1x8x8xf32> to vector<1x8x8xf32>
    %92 = vector.shape_cast %89 : vector<1x8x8xf32> to vector<1x1x8x8xf32>
    tpu.vector_store %arg15[%c1_64, %c0_65, %c0_66, %c0_67], %92 {strides = array<i32>} : memref<4x1x8x8xf32, #tpu.memory_space<vmem>>, vector<1x1x8x8xf32>,
    %93 = vector.extract_strided_slice %12 {offsets = [0, 0, 16], sizes = [1, 8, 8], strides = [1, 1, 1]} : vector<1x8x32xbf16> to vector<1x8x8xbf16>
    %94 = vector.extract_strided_slice %13 {offsets = [0, 0, 16], sizes = [1, 8, 8], strides = [1, 1, 1]} : vector<1x8x32xbf16> to vector<1x8x8xbf16>
    "tpu.trace_start"() <{level = 10 : i32, message = "bqd,bkd->bqk"}> : () -> ()
    %cst_68 = arith.constant dense<0.000000e+00> : vector<1x8x8xf32>
    %95 = tpu.matmul %93, %94, %cst_68 {dimension_numbers = #tpu.dot_dimension_numbers<[2], [2], [1], [1], [0, 0, 0, 1, 1, 1], [0], [0]>} : vector<1x8x8xbf16>, vector<1x8x8xbf16>, vector<1x8x8xf32> -> vector<1x8x8xf32>
    "tpu.trace_stop"() : () -> ()
    %96 = vector.shape_cast %16 : vector<8x8xf32> to vector<1x8x8xf32>
    %97 = arith.addf %95, %96 : vector<1x8x8xf32>
    %c2 = arith.constant 2 : index
    %c0_69 = arith.constant 0 : index
    %c0_70 = arith.constant 0 : index
    %c0_71 = arith.constant 0 : index
    %98 = vector.load %arg13[%c2, %c0_69, %c0_70, %c0_71] : memref<4x1x8x1xf32, #tpu.memory_space<vmem>>, vector<1x1x8x1xf32>
    %99 = vector.shape_cast %98 : vector<1x1x8x1xf32> to vector<1x8x1xf32>
    %c2_72 = arith.constant 2 : index
    %c0_73 = arith.constant 0 : index
    %c0_74 = arith.constant 0 : index
    %c0_75 = arith.constant 0 : index
    %100 = vector.load %arg14[%c2_72, %c0_73, %c0_74, %c0_75] : memref<4x1x8x1xf32, #tpu.memory_space<vmem>>, vector<1x1x8x1xf32>
    %101 = vector.shape_cast %100 : vector<1x1x8x1xf32> to vector<1x8x1xf32>
    %cst_76 = arith.constant dense<0xFF800000> : vector<1x8xf32>
    %102 = vector.multi_reduction <maximumf>, %97, %cst_76 [2] : vector<1x8x8xf32> to vector<1x8xf32>
    %103 = vector.shape_cast %102 : vector<1x8xf32> to vector<1x8x1xf32>
    %104 = arith.maximumf %99, %103 : vector<1x8x1xf32>
    %105 = arith.subf %99, %104 : vector<1x8x1xf32>
    %106 = math.exp %105 : vector<1x8x1xf32>
    %107 = vector.broadcast %104 : vector<1x8x1xf32> to vector<1x8x8xf32>
    %108 = arith.subf %97, %107 : vector<1x8x8xf32>
    %109 = math.exp %108 : vector<1x8x8xf32>
    %110 = arith.mulf %106, %101 : vector<1x8x1xf32>
    %cst_77 = arith.constant dense<0.000000e+00> : vector<1x8xf32>
    %111 = vector.multi_reduction <add>, %109, %cst_77 [2] : vector<1x8x8xf32> to vector<1x8xf32>
    %112 = vector.shape_cast %111 : vector<1x8xf32> to vector<1x8x1xf32>
    %113 = arith.addf %110, %112 : vector<1x8x1xf32>
    %c2_78 = arith.constant 2 : index
    %c0_79 = arith.constant 0 : index
    %c0_80 = arith.constant 0 : index
    %c0_81 = arith.constant 0 : index
    %114 = vector.load %arg14[%c2_78, %c0_79, %c0_80, %c0_81] : memref<4x1x8x1xf32, #tpu.memory_space<vmem>>, vector<1x1x8x1xf32>
    %115 = vector.shape_cast %114 : vector<1x1x8x1xf32> to vector<1x8x1xf32>
    %116 = vector.shape_cast %113 : vector<1x8x1xf32> to vector<1x1x8x1xf32>
    tpu.vector_store %arg14[%c2_78, %c0_79, %c0_80, %c0_81], %116 {strides = array<i32>} : memref<4x1x8x1xf32, #tpu.memory_space<vmem>>, vector<1x1x8x1xf32>,
    %c2_82 = arith.constant 2 : index
    %c0_83 = arith.constant 0 : index
    %c0_84 = arith.constant 0 : index
    %c0_85 = arith.constant 0 : index
    %117 = vector.load %arg13[%c2_82, %c0_83, %c0_84, %c0_85] : memref<4x1x8x1xf32, #tpu.memory_space<vmem>>, vector<1x1x8x1xf32>
    %118 = vector.shape_cast %117 : vector<1x1x8x1xf32> to vector<1x8x1xf32>
    %119 = vector.shape_cast %104 : vector<1x8x1xf32> to vector<1x1x8x1xf32>
    tpu.vector_store %arg13[%c2_82, %c0_83, %c0_84, %c0_85], %119 {strides = array<i32>} : memref<4x1x8x1xf32, #tpu.memory_space<vmem>>, vector<1x1x8x1xf32>,
    %120 = arith.truncf %109 : vector<1x8x8xf32> to vector<1x8x8xbf16>
    %121 = vector.extract_strided_slice %14 {offsets = [0, 0, 16], sizes = [1, 8, 8], strides = [1, 1, 1]} : vector<1x8x32xbf16> to vector<1x8x8xbf16>
    "tpu.trace_start"() <{level = 10 : i32, message = "bqk,bkd->bqd"}> : () -> ()
    %cst_86 = arith.constant dense<0.000000e+00> : vector<1x8x8xf32>
    %122 = tpu.matmul %120, %121, %cst_86 {dimension_numbers = #tpu.dot_dimension_numbers<[2], [1], [1], [2], [0, 0, 0, 1, 1, 2], [0], [0]>} : vector<1x8x8xbf16>, vector<1x8x8xbf16>, vector<1x8x8xf32> -> vector<1x8x8xf32>
    "tpu.trace_stop"() : () -> ()
    %c2_87 = arith.constant 2 : index
    %c0_88 = arith.constant 0 : index
    %c0_89 = arith.constant 0 : index
    %c0_90 = arith.constant 0 : index
    %123 = vector.load %arg15[%c2_87, %c0_88, %c0_89, %c0_90] : memref<4x1x8x8xf32, #tpu.memory_space<vmem>>, vector<1x1x8x8xf32>
    %124 = vector.shape_cast %123 : vector<1x1x8x8xf32> to vector<1x8x8xf32>
    %125 = vector.broadcast %106 : vector<1x8x1xf32> to vector<1x8x8xf32>
    %126 = arith.mulf %125, %124 : vector<1x8x8xf32>
    %127 = arith.addf %126, %122 : vector<1x8x8xf32>
    %c2_91 = arith.constant 2 : index
    %c0_92 = arith.constant 0 : index
    %c0_93 = arith.constant 0 : index
    %c0_94 = arith.constant 0 : index
    %128 = vector.load %arg15[%c2_91, %c0_92, %c0_93, %c0_94] : memref<4x1x8x8xf32, #tpu.memory_space<vmem>>, vector<1x1x8x8xf32>
    %129 = vector.shape_cast %128 : vector<1x1x8x8xf32> to vector<1x8x8xf32>
    %130 = vector.shape_cast %127 : vector<1x8x8xf32> to vector<1x1x8x8xf32>
    tpu.vector_store %arg15[%c2_91, %c0_92, %c0_93, %c0_94], %130 {strides = array<i32>} : memref<4x1x8x8xf32, #tpu.memory_space<vmem>>, vector<1x1x8x8xf32>,
    %131 = vector.extract_strided_slice %12 {offsets = [0, 0, 24], sizes = [1, 8, 8], strides = [1, 1, 1]} : vector<1x8x32xbf16> to vector<1x8x8xbf16>
    %132 = vector.extract_strided_slice %13 {offsets = [0, 0, 24], sizes = [1, 8, 8], strides = [1, 1, 1]} : vector<1x8x32xbf16> to vector<1x8x8xbf16>
    "tpu.trace_start"() <{level = 10 : i32, message = "bqd,bkd->bqk"}> : () -> ()
    %cst_95 = arith.constant dense<0.000000e+00> : vector<1x8x8xf32>
    %133 = tpu.matmul %131, %132, %cst_95 {dimension_numbers = #tpu.dot_dimension_numbers<[2], [2], [1], [1], [0, 0, 0, 1, 1, 1], [0], [0]>} : vector<1x8x8xbf16>, vector<1x8x8xbf16>, vector<1x8x8xf32> -> vector<1x8x8xf32>
    "tpu.trace_stop"() : () -> ()
    %134 = vector.shape_cast %16 : vector<8x8xf32> to vector<1x8x8xf32>
    %135 = arith.addf %133, %134 : vector<1x8x8xf32>
    %c3 = arith.constant 3 : index
    %c0_96 = arith.constant 0 : index
    %c0_97 = arith.constant 0 : index
    %c0_98 = arith.constant 0 : index
    %136 = vector.load %arg13[%c3, %c0_96, %c0_97, %c0_98] : memref<4x1x8x1xf32, #tpu.memory_space<vmem>>, vector<1x1x8x1xf32>
    %137 = vector.shape_cast %136 : vector<1x1x8x1xf32> to vector<1x8x1xf32>
    %c3_99 = arith.constant 3 : index
    %c0_100 = arith.constant 0 : index
    %c0_101 = arith.constant 0 : index
    %c0_102 = arith.constant 0 : index
    %138 = vector.load %arg14[%c3_99, %c0_100, %c0_101, %c0_102] : memref<4x1x8x1xf32, #tpu.memory_space<vmem>>, vector<1x1x8x1xf32>
    %139 = vector.shape_cast %138 : vector<1x1x8x1xf32> to vector<1x8x1xf32>
    %cst_103 = arith.constant dense<0xFF800000> : vector<1x8xf32>
    %140 = vector.multi_reduction <maximumf>, %135, %cst_103 [2] : vector<1x8x8xf32> to vector<1x8xf32>
    %141 = vector.shape_cast %140 : vector<1x8xf32> to vector<1x8x1xf32>
    %142 = arith.maximumf %137, %141 : vector<1x8x1xf32>
    %143 = arith.subf %137, %142 : vector<1x8x1xf32>
    %144 = math.exp %143 : vector<1x8x1xf32>
    %145 = vector.broadcast %142 : vector<1x8x1xf32> to vector<1x8x8xf32>
    %146 = arith.subf %135, %145 : vector<1x8x8xf32>
    %147 = math.exp %146 : vector<1x8x8xf32>
    %148 = arith.mulf %144, %139 : vector<1x8x1xf32>
    %cst_104 = arith.constant dense<0.000000e+00> : vector<1x8xf32>
    %149 = vector.multi_reduction <add>, %147, %cst_104 [2] : vector<1x8x8xf32> to vector<1x8xf32>
    %150 = vector.shape_cast %149 : vector<1x8xf32> to vector<1x8x1xf32>
    %151 = arith.addf %148, %150 : vector<1x8x1xf32>
    %c3_105 = arith.constant 3 : index
    %c0_106 = arith.constant 0 : index
    %c0_107 = arith.constant 0 : index
    %c0_108 = arith.constant 0 : index
    %152 = vector.load %arg14[%c3_105, %c0_106, %c0_107, %c0_108] : memref<4x1x8x1xf32, #tpu.memory_space<vmem>>, vector<1x1x8x1xf32>
    %153 = vector.shape_cast %152 : vector<1x1x8x1xf32> to vector<1x8x1xf32>
    %154 = vector.shape_cast %151 : vector<1x8x1xf32> to vector<1x1x8x1xf32>
    tpu.vector_store %arg14[%c3_105, %c0_106, %c0_107, %c0_108], %154 {strides = array<i32>} : memref<4x1x8x1xf32, #tpu.memory_space<vmem>>, vector<1x1x8x1xf32>,
    %c3_109 = arith.constant 3 : index
    %c0_110 = arith.constant 0 : index
    %c0_111 = arith.constant 0 : index
    %c0_112 = arith.constant 0 : index
    %155 = vector.load %arg13[%c3_109, %c0_110, %c0_111, %c0_112] : memref<4x1x8x1xf32, #tpu.memory_space<vmem>>, vector<1x1x8x1xf32>
    %156 = vector.shape_cast %155 : vector<1x1x8x1xf32> to vector<1x8x1xf32>
    %157 = vector.shape_cast %142 : vector<1x8x1xf32> to vector<1x1x8x1xf32>
    tpu.vector_store %arg13[%c3_109, %c0_110, %c0_111, %c0_112], %157 {strides = array<i32>} : memref<4x1x8x1xf32, #tpu.memory_space<vmem>>, vector<1x1x8x1xf32>,
    %158 = arith.truncf %147 : vector<1x8x8xf32> to vector<1x8x8xbf16>
    %159 = vector.extract_strided_slice %14 {offsets = [0, 0, 24], sizes = [1, 8, 8], strides = [1, 1, 1]} : vector<1x8x32xbf16> to vector<1x8x8xbf16>
    "tpu.trace_start"() <{level = 10 : i32, message = "bqk,bkd->bqd"}> : () -> ()
    %cst_113 = arith.constant dense<0.000000e+00> : vector<1x8x8xf32>
    %160 = tpu.matmul %158, %159, %cst_113 {dimension_numbers = #tpu.dot_dimension_numbers<[2], [1], [1], [2], [0, 0, 0, 1, 1, 2], [0], [0]>} : vector<1x8x8xbf16>, vector<1x8x8xbf16>, vector<1x8x8xf32> -> vector<1x8x8xf32>
    "tpu.trace_stop"() : () -> ()
    %c3_114 = arith.constant 3 : index
    %c0_115 = arith.constant 0 : index
    %c0_116 = arith.constant 0 : index
    %c0_117 = arith.constant 0 : index
    %161 = vector.load %arg15[%c3_114, %c0_115, %c0_116, %c0_117] : memref<4x1x8x8xf32, #tpu.memory_space<vmem>>, vector<1x1x8x8xf32>
    %162 = vector.shape_cast %161 : vector<1x1x8x8xf32> to vector<1x8x8xf32>
    %163 = vector.broadcast %144 : vector<1x8x1xf32> to vector<1x8x8xf32>
    %164 = arith.mulf %163, %162 : vector<1x8x8xf32>
    %165 = arith.addf %164, %160 : vector<1x8x8xf32>
    %c3_118 = arith.constant 3 : index
    %c0_119 = arith.constant 0 : index
    %c0_120 = arith.constant 0 : index
    %c0_121 = arith.constant 0 : index
    %166 = vector.load %arg15[%c3_118, %c0_119, %c0_120, %c0_121] : memref<4x1x8x8xf32, #tpu.memory_space<vmem>>, vector<1x1x8x8xf32>
    %167 = vector.shape_cast %166 : vector<1x1x8x8xf32> to vector<1x8x8xf32>
    %168 = vector.shape_cast %165 : vector<1x8x8xf32> to vector<1x1x8x8xf32>
    tpu.vector_store %arg15[%c3_118, %c0_119, %c0_120, %c0_121], %168 {strides = array<i32>} : memref<4x1x8x8xf32, #tpu.memory_space<vmem>>, vector<1x1x8x8xf32>,
    %c0_i32_122 = arith.constant 0 : i32
    %169 = arith.cmpi eq, %arg1, %c0_i32_122 : i32
    %170 = arith.extui %169 : i1 to i32
    %c0_i32_123 = arith.constant 0 : i32
    %171 = arith.cmpi ne, %170, %c0_i32_123 : i32
    scf.if %171 {
      %c0_124 = arith.constant 0 : index
      %c0_125 = arith.constant 0 : index
      %c0_126 = arith.constant 0 : index
      %c0_127 = arith.constant 0 : index
      %172 = vector.load %arg14[%c0_124, %c0_125, %c0_126, %c0_127] : memref<4x1x8x1xf32, #tpu.memory_space<vmem>>, vector<1x1x8x1xf32>
      %173 = vector.shape_cast %172 : vector<1x1x8x1xf32> to vector<1x8x1xf32>
      %174 = tpu.reciprocal %173 {approx = true} : vector<1x8x1xf32> -> vector<1x8x1xf32>
      %c0_128 = arith.constant 0 : index
      %c0_129 = arith.constant 0 : index
      %c0_130 = arith.constant 0 : index
      %c0_131 = arith.constant 0 : index
      %175 = vector.load %arg15[%c0_128, %c0_129, %c0_130, %c0_131] : memref<4x1x8x8xf32, #tpu.memory_space<vmem>>, vector<1x1x8x8xf32>
      %176 = vector.shape_cast %175 : vector<1x1x8x8xf32> to vector<1x8x8xf32>
      %177 = vector.broadcast %174 : vector<1x8x1xf32> to vector<1x8x8xf32>
      %178 = arith.mulf %176, %177 : vector<1x8x8xf32>
      %179 = arith.truncf %178 : vector<1x8x8xf32> to vector<1x8x8xbf16>
      %c1_132 = arith.constant 1 : index
      %c0_133 = arith.constant 0 : index
      %c0_134 = arith.constant 0 : index
      %c0_135 = arith.constant 0 : index
      %180 = vector.load %arg14[%c1_132, %c0_133, %c0_134, %c0_135] : memref<4x1x8x1xf32, #tpu.memory_space<vmem>>, vector<1x1x8x1xf32>
      %181 = vector.shape_cast %180 : vector<1x1x8x1xf32> to vector<1x8x1xf32>
      %182 = tpu.reciprocal %181 {approx = true} : vector<1x8x1xf32> -> vector<1x8x1xf32>
      %c1_136 = arith.constant 1 : index
      %c0_137 = arith.constant 0 : index
      %c0_138 = arith.constant 0 : index
      %c0_139 = arith.constant 0 : index
      %183 = vector.load %arg15[%c1_136, %c0_137, %c0_138, %c0_139] : memref<4x1x8x8xf32, #tpu.memory_space<vmem>>, vector<1x1x8x8xf32>
      %184 = vector.shape_cast %183 : vector<1x1x8x8xf32> to vector<1x8x8xf32>
      %185 = vector.broadcast %182 : vector<1x8x1xf32> to vector<1x8x8xf32>
      %186 = arith.mulf %184, %185 : vector<1x8x8xf32>
      %187 = arith.truncf %186 : vector<1x8x8xf32> to vector<1x8x8xbf16>
      %c2_140 = arith.constant 2 : index
      %c0_141 = arith.constant 0 : index
      %c0_142 = arith.constant 0 : index
      %c0_143 = arith.constant 0 : index
      %188 = vector.load %arg14[%c2_140, %c0_141, %c0_142, %c0_143] : memref<4x1x8x1xf32, #tpu.memory_space<vmem>>, vector<1x1x8x1xf32>
      %189 = vector.shape_cast %188 : vector<1x1x8x1xf32> to vector<1x8x1xf32>
      %190 = tpu.reciprocal %189 {approx = true} : vector<1x8x1xf32> -> vector<1x8x1xf32>
      %c2_144 = arith.constant 2 : index
      %c0_145 = arith.constant 0 : index
      %c0_146 = arith.constant 0 : index
      %c0_147 = arith.constant 0 : index
      %191 = vector.load %arg15[%c2_144, %c0_145, %c0_146, %c0_147] : memref<4x1x8x8xf32, #tpu.memory_space<vmem>>, vector<1x1x8x8xf32>
      %192 = vector.shape_cast %191 : vector<1x1x8x8xf32> to vector<1x8x8xf32>
      %193 = vector.broadcast %190 : vector<1x8x1xf32> to vector<1x8x8xf32>
      %194 = arith.mulf %192, %193 : vector<1x8x8xf32>
      %195 = arith.truncf %194 : vector<1x8x8xf32> to vector<1x8x8xbf16>
      %c3_148 = arith.constant 3 : index
      %c0_149 = arith.constant 0 : index
      %c0_150 = arith.constant 0 : index
      %c0_151 = arith.constant 0 : index
      %196 = vector.load %arg14[%c3_148, %c0_149, %c0_150, %c0_151] : memref<4x1x8x1xf32, #tpu.memory_space<vmem>>, vector<1x1x8x1xf32>
      %197 = vector.shape_cast %196 : vector<1x1x8x1xf32> to vector<1x8x1xf32>
      %198 = tpu.reciprocal %197 {approx = true} : vector<1x8x1xf32> -> vector<1x8x1xf32>
      %c3_152 = arith.constant 3 : index
      %c0_153 = arith.constant 0 : index
      %c0_154 = arith.constant 0 : index
      %c0_155 = arith.constant 0 : index
      %199 = vector.load %arg15[%c3_152, %c0_153, %c0_154, %c0_155] : memref<4x1x8x8xf32, #tpu.memory_space<vmem>>, vector<1x1x8x8xf32>
      %200 = vector.shape_cast %199 : vector<1x1x8x8xf32> to vector<1x8x8xf32>
      %201 = vector.broadcast %198 : vector<1x8x1xf32> to vector<1x8x8xf32>
      %202 = arith.mulf %200, %201 : vector<1x8x8xf32>
      %203 = arith.truncf %202 : vector<1x8x8xf32> to vector<1x8x8xbf16>
      %204 = tpu.concatenate %179, %187, %195, %203 in 2 : vector<1x8x8xbf16>, vector<1x8x8xbf16>, vector<1x8x8xbf16>, vector<1x8x8xbf16> -> vector<1x8x32xbf16>
      %205 = vector.shape_cast %204 : vector<1x8x32xbf16> to vector<8x32xbf16>
      %c0_156 = arith.constant 0 : index
      %c0_157 = arith.constant 0 : index
      %206 = vector.load %arg9[%c0_156, %c0_157] : memref<32x32xbf16, #tpu.memory_space<vmem>>, vector<32x32xbf16>
      %cst_158 = arith.constant dense<0.000000e+00> : vector<8x32xf32>
      %207 = tpu.matmul %205, %206, %cst_158 {dimension_numbers = #tpu.dot_dimension_numbers<[1], [0], [0], [1], [0, 0, 1, 1], [], []>} : vector<8x32xbf16>, vector<32x32xbf16>, vector<8x32xf32> -> vector<8x32xf32>
      %c0_159 = arith.constant 0 : index
      %c0_160 = arith.constant 0 : index
      %208 = vector.load %arg10[%c0_159, %c0_160] : memref<1x32xf32, #tpu.memory_space<vmem>>, vector<1x32xf32>
      %209 = vector.broadcast %208 : vector<1x32xf32> to vector<8x32xf32>
      %210 = arith.addf %207, %209 : vector<8x32xf32>
      %c0_161 = arith.constant 0 : index
      %c0_162 = arith.constant 0 : index
      %211 = vector.load %arg11[%c0_161, %c0_162] : memref<8x32xf32, #tpu.memory_space<vmem>>, vector<8x32xf32>
      tpu.vector_store %arg11[%c0_161, %c0_162], %210 {strides = array<i32>} : memref<8x32xf32, #tpu.memory_space<vmem>>, vector<8x32xf32>,
    } else {
    }
    return
  }
  func.func @transform_0(%arg0: i32, %arg1: i32) -> (i32, i32) {
    %c0_i32 = arith.constant 0 : i32
    %c0_i32_0 = arith.constant 0 : i32
    return %arg0, %c0_i32 : i32, i32
  }
  func.func @transform_1(%arg0: i32, %arg1: i32) -> (i32, i32) {
    %c1_i32 = arith.constant 1 : i32
    %0 = arith.muli %arg0, %c1_i32 : i32
    %1 = arith.addi %0, %arg1 : i32
    %c0_i32 = arith.constant 0 : i32
    %c0_i32_0 = arith.constant 0 : i32
    return %1, %c0_i32 : i32, i32
  }
  func.func @transform_2(%arg0: i32, %arg1: i32) -> (i32, i32) {
    %c1_i32 = arith.constant 1 : i32
    %0 = arith.muli %arg0, %c1_i32 : i32
    %1 = arith.addi %0, %arg1 : i32
    %c0_i32 = arith.constant 0 : i32
    %c0_i32_0 = arith.constant 0 : i32
    return %1, %c0_i32 : i32, i32
  }
  func.func @transform_3(%arg0: i32, %arg1: i32) -> (i32, i32) {
    %c0_i32 = arith.constant 0 : i32
    %c0_i32_0 = arith.constant 0 : i32
    return %c0_i32, %arg1 : i32, i32
  }
  func.func @transform_4(%arg0: i32, %arg1: i32) -> (i32, i32) {
    %c0_i32 = arith.constant 0 : i32
    %c0_i32_0 = arith.constant 0 : i32
    %c0_i32_1 = arith.constant 0 : i32
    return %c0_i32, %c0_i32_0 : i32, i32
  }
  func.func @transform_5(%arg0: i32, %arg1: i32) -> (i32, i32) {
    %c0_i32 = arith.constant 0 : i32
    %c0_i32_0 = arith.constant 0 : i32
    %c0_i32_1 = arith.constant 0 : i32
    return %c0_i32, %c0_i32_0 : i32, i32
  }
  func.func @transform_6(%arg0: i32, %arg1: i32) -> (i32, i32) {
    %c0_i32 = arith.constant 0 : i32
    %c0_i32_0 = arith.constant 0 : i32
    %c0_i32_1 = arith.constant 0 : i32
    return %c0_i32, %c0_i32_0 : i32, i32
  }
  func.func @transform_7(%arg0: i32, %arg1: i32) -> (i32, i32) {
    %c0_i32 = arith.constant 0 : i32
    %c0_i32_0 = arith.constant 0 : i32
    %c0_i32_1 = arith.constant 0 : i32
    return %c0_i32, %c0_i32_0 : i32, i32
  }
  func.func @transform_8(%arg0: i32, %arg1: i32) -> (i32, i32) {
    %c0_i32 = arith.constant 0 : i32
    %c0_i32_0 = arith.constant 0 : i32
    %c0_i32_1 = arith.constant 0 : i32
    return %c0_i32, %c0_i32_0 : i32, i32
  }
  func.func @transform_9(%arg0: i32, %arg1: i32) -> (i32, i32) {
    %c0_i32 = arith.constant 0 : i32
    %c0_i32_0 = arith.constant 0 : i32
    return %arg0, %c0_i32 : i32, i32
  }
}

</mosaic_0001>

<bundles_post_ra>
// kernel: tpu_custom_call.1
= control target key start
LH: loop header
LB: loop body
LE: loop exit
PB: predicated region body
PF: predicated region fallthrough
CT: control target
= control target key end

     0   :  { %s2773_s0 = inlined_call_operand.hbm [shape: bf16[16,32], index: 0, kind: input, shape index: {}]   ;;  %s2774_s1 = inlined_call_operand.hbm [shape: bf16[16,32], index: 1, kind: input, shape index: {}]   ;;  %s2775_s2 = inlined_call_operand.hbm [shape: bf16[16,32], index: 2, kind: input, shape index: {}]   ;;  %s2776_s3 = inlined_call_operand.hbm [shape: bf16[8,8], index: 3, kind: input, shape index: {}]   ;;  %s2777_s4 = inlined_call_operand.hbm [shape: bf16[32,32], index: 4, kind: input, shape index: {}]   ;;  %s2778_s5 = inlined_call_operand.vmem [shape: bf16[32,32], index: 5, kind: input, shape index: {}]   ;;  %s2779_s6 = inlined_call_operand.hbm [shape: bf16[32,32], index: 6, kind: input, shape index: {}]   ;;  %s2780_s7 = inlined_call_operand.hbm [shape: bf16[32,32], index: 7, kind: input, shape index: {}]   ;;  %s2781_s8 = inlined_call_operand.vmem [shape: f32[1,32], index: 8, kind: input, shape index: {}]   ;;  %s2782_s9 = inlined_call_operand.hbm [shape: f32[16,32], index: 9, kind: output, shape index: {}]  }
   0x1   :  { %2809 = sst [smem:[#allocation31_spill]] %s2774_s1 }
   0x2   :  { %2810 = sst [smem:[#allocation32_spill]] %s2776_s3 }
   0x3   :  { %2811 = sst [smem:[#allocation33_spill]] %s2779_s6 }
   0x4   :  { %2812 = sst [smem:[#allocation34_spill]] %s2781_s8 }
   0x5   :  { %2813 = sst [smem:[#allocation35_spill]] %s2782_s9 }
   0x6   :  { %14 = vsyncpa [#allocation7], 0 }
   0x7   :  { %16 = vsyncpa [#allocation7 + $0x1], 0 }
   0x8   :  { %17 = vsyncpa [#allocation10], 0 }
   0x9   :  { %19 = vsyncpa [#allocation10 + $0x1], 0 }
   0xa   :  { %20 = vsyncpa [#allocation13], 0 }
   0xb   :  { %21 = vsyncpa [#allocation16], 0 }
   0xc   :  { %22 = vsyncpa [#allocation8], 0 }
   0xd   :  { %24 = vsyncpa [#allocation8 + $0x1], 0  ;;  %s2239_s30 = smov 0   ;;  %s2241_s10 = smov 0  }
   0xe   :  { %s2243_s11 = smov 0   ;;  %s2245_s12 = smov 0  }
   0xf   :  { %s2247_s13 = smov 0   ;;  %s2249_s14 = smov 0  }
  0x10 LB: > { %2814 = sst [smem:[#allocation24_spill]] %s2147_s30  ;;  %s2270_s15 = sadd.s32 4294967295, %s2167_s14   ;;  %s2167_s14 = sphi %s2249_s14, %s30_s14   ;;  %s2163_s13 = sphi %s2247_s13, %s2859_s13   ;;  %s2159_s12 = sphi %s2245_s12, %s2858_s12   ;;  %s2155_s11 = sphi %s2243_s11, %s2862_s11   ;;  %s2151_s10 = sphi %s2241_s10, %s2861_s10   ;;  %s2147_s30 = sphi %s2239_s30, %s2860_s30  }
  0x11   : > { %2815 = sst [smem:[#allocation25_spill]] %s2163_s13  ;;  %p1556_p0 = scmp.ge.s32.totalorder %s2167_s14, 1 }
  0x12   : > { %2816 = sst [smem:[#allocation26_spill]] %s2167_s14  ;;  %p2783_p1 = scmp.eq.s32.totalorder %s2270_s15, 0 }
  0x13   : > { %p286_p2 = scmp.lt.s32.totalorder %s2167_s14, 3  ;;  %s2169_s17 = smov [#allocation12]  }
  0x14   : > { %s301_s18 = sshll.u32 %s2169_s17, 4  ;;  %s2170_s20 = smov [#allocation15]   ;;  %s302_s18 = int_to_ptr.vmem [resolvable:$true] %s301_s18 }
  0x15   : > { %p2275_p3 = pnand %p1556_p0, %p286_p2  ;;  %s327_s21 = sshll.u32 %s2170_s20, 4  ;;  %s2288_s21 = int_to_ptr.vmem [resolvable:$true] %s327_s21 }
  0x16   : > { %s2819_s3 = sld [smem:[#allocation32_spill]] }
  0x17   : > { %s2817_s16 = scalar_select %p2275_p3, 1, 0 }
  0x18   : > { %p1735_p5 = pneg %p2275_p3 }
  0x1a   : > { %p2284_p6 = pnand %p1735_p5, %p2783_p1 }
  0x1c   : > { %s2818_s19 = scalar_select %p2284_p6, 1, 0 }
  0x1d   : > { %s1871_s24 = scalar_lea.hbm %s2819_s3, 64  ;;  %p2298_p8 = pneg %p2284_p6 }
  0x1e   : > { %p1872_p7 = scmp.ne.s32.totalorder %s2819_s3, %s1871_s24  ;;  %p1878_p11 = scmp.lt.u32.totalorder %s1871_s24, %s2819_s3 }
  0x1f   : > { %s2820_s27 = scalar_select %p2298_p8, 1, 0 }
  0x20   : > { %p1874_p9 = pnand %p2298_p8, %p1872_p7 }
  0x22   : > { %p1875_p10 = pneg %p1874_p9 }
  0x24   : > { %p1880_p12 = pnand %p1878_p11, %p1875_p10 }
  0x26   : > { %1883 = shalt.err (!%p1880_p12)
}
  0x27   : > { %s1884_s17 = scalar_lea.vmem %s302_s18, 64  ;;  %p1892_p5 = scmp.lt.s32.totalorder %s302_s18, %s302_s18 }
  0x28   : > { %p1885_p13 = scmp.ne.s32.totalorder %s302_s18, %s1884_s17  ;;  %p1893_p4 = scmp.lt.s32.totalorder %s1884_s17, %s1884_s17 }
  0x2a   : > { %p1887_p0 = pnand %p1885_p13, %p2298_p8  ;;  %p1894_p1 = por %p1893_p4, %p1892_p5 }
  0x2c   : > { %p1888_p2 = pneg %p1887_p0 }
  0x2e   : > { %p1895_p3 = pnand %p1894_p1, %p1888_p2 }
  0x30   : > { %1898 = shalt.err (!%p1895_p3)
}
  0x31   : > { %1738 = dma.hbm_to_vmem [thread:$0]  (!%p2284_p6), %s2819_s3, 64, %s302_s18, [#allocation13]  }
  0x32   : > { %s2821_s6 = sld [smem:[#allocation33_spill]] }
  0x38   : > { %s1899_s25 = scalar_lea.hbm %s2821_s6, 256 }
  0x39   : > { %p1900_p7 = scmp.ne.s32.totalorder %s2821_s6, %s1899_s25  ;;  %p1906_p1 = scmp.lt.u32.totalorder %s1899_s25, %s2821_s6 }
  0x3b   : > { %p1902_p9 = pnand %p1900_p7, %p2298_p8 }
  0x3d   : > { %p1903_p4 = pneg %p1902_p9 }
  0x3f   : > { %p1908_p3 = pnand %p1906_p1, %p1903_p4 }
  0x41   : > { %1911 = shalt.err (!%p1908_p3)
}
  0x42   : > { %s1912_s18 = scalar_lea.vmem %s2288_s21, 256  ;;  %p1920_p13 = scmp.lt.s32.totalorder %s2288_s21, %s2288_s21 }
  0x43   : > { %p1913_p10 = scmp.ne.s32.totalorder %s2288_s21, %s1912_s18  ;;  %p1921_p0 = scmp.lt.s32.totalorder %s1912_s18, %s1912_s18 }
  0x45   : > { %p1915_p11 = pnand %p1913_p10, %p2298_p8  ;;  %p1922_p2 = por %p1921_p0, %p1920_p13 }
  0x47   : > { %p1916_p12 = pneg %p1915_p11 }
  0x49   : > { %p1923_p5 = pnand %p1922_p2, %p1916_p12 }
  0x4b   : > { %1926 = shalt.err (!%p1923_p5)
}
  0x4c   : > { %s2785_s20 = smov 64   ;;  %s2787_s22 = smov 4  }
  0x4d   : > { %1744 = dma.hbm_to_vmem [thread:$0]  (!%p2284_p6), %s2821_s6, 256, %s2288_s21, [#allocation16], %s2785_s20, %s2785_s20, %s2787_s22  }
  0x4e   : > { %s1555_s25 = sadd.s32 4294967294, %s2167_s14   ;;  %s42_s26 = sadd.s32 1, %s2163_s13 }
  0x4f   : > { %p44_p7 = scmp.ge.s32.totalorder %s42_s26, 2  ;;  %s49_s28 = sadd.s32 1, %s2155_s11 }
  0x50   : > { %p56_p9 = scmp.ne.s32.totalorder %s2155_s11, %s2151_s10  ;;  %p57_p4 = scmp.eq.s32.totalorder %s2167_s14, 0 }
  0x51   : > { %s2864_s26 = smov (%p44_p7, %s42_s26), 0  ;;  %p62_p3 = scmp.ne.s32.totalorder %s2151_s10, %s2147_s30 }
  0x52   : > { %2822 = sst [smem:[#allocation27_spill]] %s2864_s26  ;;  %p2348_p1 = por %p57_p4, %p56_p9 }
  0x53   : > { %s46_s21 = ssub.s32 %s2163_s13, %s2864_s26  ;;  %p273_p10 = scmp.eq.s32.totalorder %s2270_s15, 1 }
  0x54   : > { %p47_p11 = scmp.eq.s32.totalorder %s46_s21, 0  ;;  %p2824_p12 = scmp.eq.s32.totalorder %s2270_s15, 0 }
  0x55   : > { %p2363_p0 = por %p273_p10, %p56_p9  ;;  %p279_p2 = scmp.eq.s32.totalorder %s1555_s25, 1 }
  0x56   : > { %p2359_p13 = por %p2824_p12, %p62_p3  ;;  %p1766_p7 = scmp.lt.s32.totalorder %s2167_s14, 2 }
  0x57   : > { %s2826_s18 = scalar_select %p2363_p0, 1, 0 }
  0x58   : > { %s2825_s17 = scalar_select %p2359_p13, 1, 0 }
  0x59   : > { %2827 = sst [smem:[#allocation28_spill]] %s2826_s18  ;;  %p2370_p5 = por %p279_p2, %p62_p3 }
  0x5a   : > { %s2368_s23 = scalar_select %p47_p11, %s2155_s11, %s49_s28  }
  0x5b   : > { %s2829_s24 = scalar_select %p2370_p5, 1, 0 }
  0x5c   : > { %2828 = sst [smem:[#allocation29_spill]] %s2368_s23  ;;  %s2791_s20 = sand.u32 1, %s2155_s11  }
  0x5d   : > { %2830 = sst [smem:[#allocation30_spill]] %s2829_s24  ;;  %s2377_s22 = sshll.u32 %s2163_s13, 6 }
  0x5e   : > { %s2381_s21 = sshll.u32 %s2791_s20, 2  ;;  %p2385_p9 = pnand %p1766_p7, %p2348_p1 }
  0x5f   : > { %s375_s25 = sand.u32 1, %s2167_s14   ;;  %s2832_s1 = sld [smem:[#allocation31_spill]] }
  0x60   : > { %s2831_s3 = scalar_select %p2385_p9, 1, 0 }
  0x61   : > { %s379_s13 = scalar_lea.vmem [#allocation9], %s2381_s21  ;;  %s2399_s29 = scalar_lea.sflag [#allocation10], %s375_s25 }
  0x62   : > { %s387_s20 = sshll.u32 %s379_s13, 4  ;;  %p2405_p1 = pneg %p2385_p9  ;;  %s2397_s20 = int_to_ptr.vmem [resolvable:$true] %s387_s20 }
  0x64   : > { %s2833_s14 = scalar_select %p2405_p1, 1, 0 }
  0x65   : > { %s2394_s26 = scalar_lea.hbm %s2832_s1, %s2377_s22  ;;  %s1932_s24 = scalar_lea.hbm %s2832_s1, 128 }
  0x66   : > { %s1927_s23 = scalar_lea.hbm %s2394_s26, 64  ;;  %p1933_p11 = scmp.lt.u32.totalorder %s2394_s26, %s2832_s1 }
  0x67   : > { %p1928_p4 = scmp.ne.s32.totalorder %s2394_s26, %s1927_s23  ;;  %p1934_p12 = scmp.lt.u32.totalorder %s1932_s24, %s1927_s23 }
  0x68   : > { %p1936_p7 = scmp.lt.u32.totalorder %s1927_s23, %s2394_s26 }
  0x69   : > { %p1930_p3 = pnand %p2405_p1, %p1928_p4  ;;  %p1935_p2 = por %p1934_p12, %p1933_p11 }
  0x6b   : > { %p1931_p10 = pneg %p1930_p3  ;;  %p1937_p5 = por %p1936_p7, %p1935_p2 }
  0x6d   : > { %p1938_p0 = pnand %p1937_p5, %p1931_p10 }
  0x6f   : > { %1941 = shalt.err (!%p1938_p0)
}
  0x70   : > { %s1942_s25 = scalar_lea.vmem %s2397_s20, 64  ;;  %s2173_s6 = smov [#allocation9]  }
  0x71   : > { %p1943_p4 = scmp.ne.s32.totalorder %s2397_s20, %s1942_s25  ;;  %s1947_s28 = sshll.u32 %s2173_s6, 4  ;;  %s1948_s28 = int_to_ptr.vmem [resolvable:$false] %s1947_s28 }
  0x72   : > { %s1949_s30 = scalar_lea.vmem %s1948_s28, 128  ;;  %p1950_p6 = scmp.lt.s32.totalorder %s2397_s20, %s1948_s28 }
  0x73   : > { %p1945_p3 = pnand %p1943_p4, %p2405_p1  ;;  %p1951_p8 = scmp.lt.s32.totalorder %s1949_s30, %s1942_s25 }
  0x75   : > { %p1946_p13 = pneg %p1945_p3  ;;  %p1952_p11 = por %p1951_p8, %p1950_p6 }
  0x77   : > { %p1953_p12 = pnand %p1952_p11, %p1946_p13 }
  0x79   : > { %1956 = shalt.err (!%p1953_p12)
}
  0x7a   : > { %1754 = dma.hbm_to_vmem [thread:$0]  (!%p2385_p9), %s2394_s26, 64, %s2397_s20, %s2399_s29  }
  0x7b   : > { %s2174_s23 = smov [#allocation14]   ;;  %s2175_s13 = smov [#allocation17]  }
  0x7c   : > { %s311_s24 = sshll.u32 %s2174_s23, 4  ;;  %s340_s1 = sshll.u32 %s2175_s13, 4  ;;  %s312_s24 = int_to_ptr.vmem [resolvable:$true] %s311_s24  ;;  %s341_s1 = int_to_ptr.vmem [resolvable:$true] %s340_s1 }
  0x7d   : > { %s1957_s28 = scalar_lea.hbm %s2777_s4, 256  ;;  %p2834_p8 = scmp.ne.s32.totalorder %s2820_s27, 0 }
  0x7e   : > { %p1958_p6 = scmp.ne.s32.totalorder %s2777_s4, %s1957_s28  ;;  %p1964_p5 = scmp.lt.u32.totalorder %s1957_s28, %s2777_s4 }
  0x80   : > { %p1960_p13 = pnand %p1958_p6, %p2834_p8 }
  0x82   : > { %p1961_p0 = pneg %p1960_p13 }
  0x84   : > { %p1966_p10 = pnand %p1964_p5, %p1961_p0 }
  0x86   : > { %1969 = shalt.err (!%p1966_p10)
}
  0x87   : > { %s1970_s20 = scalar_lea.vmem %s312_s24, 256  ;;  %p1978_p3 = scmp.lt.s32.totalorder %s312_s24, %s312_s24 }
  0x88   : > { %p1971_p2 = scmp.ne.s32.totalorder %s312_s24, %s1970_s20  ;;  %p1979_p11 = scmp.lt.s32.totalorder %s1970_s20, %s1970_s20 }
  0x8a   : > { %p1973_p7 = pnand %p1971_p2, %p2834_p8  ;;  %p1980_p12 = por %p1979_p11, %p1978_p3 }
  0x8c   : > { %p1974_p4 = pneg %p1973_p7 }
  0x8e   : > { %p1981_p9 = pnand %p1980_p12, %p1974_p4 }
  0x90   : > { %1984 = shalt.err (!%p1981_p9)
}
  0x91   : > { %p2835_p6 = scmp.ne.s32.totalorder %s2818_s19, 0  ;;  %s2836_s9 = smov 4  }
  0x92   : > { %s2837_s26 = smov 64   ;;  %s1985_s6 = scalar_lea.hbm %s2780_s7, 256 }
  0x93   : > { %1741 = dma.hbm_to_vmem [thread:$0]  (!%p2835_p6), %s2777_s4, 256, %s312_s24, [#allocation13], %s2837_s26, %s2837_s26, %s2836_s9  }
  0x94   : > { %p1986_p13 = scmp.ne.s32.totalorder %s2780_s7, %s1985_s6  ;;  %p1992_p5 = scmp.lt.u32.totalorder %s1985_s6, %s2780_s7 }
  0x96   : > { %p1988_p9 = pnand %p1986_p13, %p2834_p8 }
  0x98   : > { %p1989_p0 = pneg %p1988_p9 }
  0x9a   : > { %p1994_p10 = pnand %p1992_p5, %p1989_p0 }
  0x9c   : > { %1997 = shalt.err (!%p1994_p10)
}
  0x9d   : > { %s1998_s8 = scalar_lea.vmem %s341_s1, 256  ;;  %p2006_p3 = scmp.lt.s32.totalorder %s341_s1, %s341_s1 }
  0x9e   : > { %p1999_p2 = scmp.ne.s32.totalorder %s341_s1, %s1998_s8  ;;  %p2007_p11 = scmp.lt.s32.totalorder %s1998_s8, %s1998_s8 }
  0xa0   : > { %p2001_p7 = pnand %p1999_p2, %p2834_p8  ;;  %p2008_p12 = por %p2007_p11, %p2006_p3 }
  0xa2   : > { %p2002_p4 = pneg %p2001_p7 }
  0xa4   : > { %p2009_p1 = pnand %p2008_p12, %p2002_p4 }
  0xa6   : > { %2012 = shalt.err (!%p2009_p1)
}
  0xa7   : > { %1747 = dma.hbm_to_vmem [thread:$0]  (!%p2835_p6), %s2780_s7, 256, %s341_s1, [#allocation16], %s2837_s26, %s2837_s26, %s2836_s9  }
  0xa8   : > { %s2475_s13 = scalar_lea.hbm %s2773_s0, %s2377_s22  ;;  %s361_s19 = scalar_lea.vmem [#allocation6], %s2381_s21 }
  0xa9   : > { %s368_s6 = sshll.u32 %s361_s19, 4  ;;  %s2484_s30 = scalar_lea.hbm %s2775_s2, %s2377_s22  ;;  %s2478_s6 = int_to_ptr.vmem [resolvable:$true] %s368_s6 }
  0xaa   : > { %s2838_s20 = sand.u32 1, %s2155_s11   ;;  %s2013_s9 = scalar_lea.hbm %s2475_s13, 64 }
  0xab   : > { %s358_s1 = scalar_lea.sflag [#allocation7], %s2838_s20  ;;  %p2014_p1 = scmp.ne.s32.totalorder %s2475_s13, %s2013_s9 }
  0xac   : > { %p2839_p8 = scmp.ne.s32.totalorder %s2833_s14, 0  ;;  %s2018_s24 = scalar_lea.hbm %s2773_s0, 128 }
  0xad   : > { %p2019_p9 = scmp.lt.u32.totalorder %s2475_s13, %s2773_s0  ;;  %p2020_p0 = scmp.lt.u32.totalorder %s2018_s24, %s2013_s9 }
  0xae   : > { %p2016_p6 = pnand %p2014_p1, %p2839_p8  ;;  %p2022_p10 = scmp.lt.u32.totalorder %s2013_s9, %s2475_s13 }
  0xaf   : > { %p2021_p5 = por %p2020_p0, %p2019_p9 }
  0xb0   : > { %p2017_p13 = pneg %p2016_p6 }
  0xb1   : > { %p2023_p2 = por %p2022_p10, %p2021_p5 }
  0xb3   : > { %p2024_p7 = pnand %p2023_p2, %p2017_p13 }
  0xb5   : > { %2027 = shalt.err (!%p2024_p7)
}
  0xb6   : > { %s2028_s22 = scalar_lea.vmem %s2478_s6, 64  ;;  %s2176_s23 = smov [#allocation6]  }
  0xb7   : > { %p2029_p4 = scmp.ne.s32.totalorder %s2478_s6, %s2028_s22  ;;  %s2033_s19 = sshll.u32 %s2176_s23, 4  ;;  %s2034_s19 = int_to_ptr.vmem [resolvable:$false] %s2033_s19 }
  0xb8   : > { %s2035_s28 = scalar_lea.vmem %s2034_s19, 128  ;;  %p2036_p12 = scmp.lt.s32.totalorder %s2478_s6, %s2034_s19 }
  0xb9   : > { %p2031_p3 = pnand %p2029_p4, %p2839_p8  ;;  %p2037_p1 = scmp.lt.s32.totalorder %s2035_s28, %s2028_s22 }
  0xbb   : > { %p2032_p11 = pneg %p2031_p3  ;;  %p2038_p6 = por %p2037_p1, %p2036_p12 }
  0xbd   : > { %p2039_p9 = pnand %p2038_p6, %p2032_p11 }
  0xbf   : > { %2042 = shalt.err (!%p2039_p9)
}
  0xc0   : > { %p2840_p13 = scmp.ne.s32.totalorder %s2831_s3, 0  ;;  %s398_s25 = scalar_lea.vmem [#allocation11], %s2381_s21 }
  0xc1   : > { %s406_s20 = sshll.u32 %s398_s25, 4  ;;  %s2043_s9 = scalar_lea.hbm %s2484_s30, 64  ;;  %s407_s20 = int_to_ptr.vmem [resolvable:$true] %s406_s20 }
  0xc2   : > { %1751 = dma.hbm_to_vmem [thread:$0]  (!%p2840_p13), %s2475_s13, 64, %s2478_s6, %s358_s1  }
  0xc3   : > { %p2044_p0 = scmp.ne.s32.totalorder %s2484_s30, %s2043_s9  ;;  %s2048_s24 = scalar_lea.hbm %s2775_s2, 128 }
  0xc4   : > { %p2049_p2 = scmp.lt.u32.totalorder %s2484_s30, %s2775_s2  ;;  %p2050_p7 = scmp.lt.u32.totalorder %s2048_s24, %s2043_s9 }
  0xc5   : > { %p2046_p5 = pnand %p2044_p0, %p2839_p8  ;;  %p2052_p3 = scmp.lt.u32.totalorder %s2043_s9, %s2484_s30 }
  0xc6   : > { %p2051_p4 = por %p2050_p7, %p2049_p2 }
  0xc7   : > { %p2047_p10 = pneg %p2046_p5 }
  0xc8   : > { %p2053_p11 = por %p2052_p3, %p2051_p4 }
  0xca   : > { %p2054_p12 = pnand %p2053_p11, %p2047_p10 }
  0xcc   : > { %2057 = shalt.err (!%p2054_p12)
}
  0xcd   : > { %s2058_s21 = scalar_lea.vmem %s407_s20, 64  ;;  %s2177_s13 = smov [#allocation11]  }
  0xce   : > { %p2059_p1 = scmp.ne.s32.totalorder %s407_s20, %s2058_s21  ;;  %s2063_s6 = sshll.u32 %s2177_s13, 4  ;;  %s2064_s6 = int_to_ptr.vmem [resolvable:$false] %s2063_s6 }
  0xcf   : > { %s2065_s1 = scalar_lea.vmem %s2064_s6, 128  ;;  %p2066_p0 = scmp.lt.s32.totalorder %s407_s20, %s2064_s6 }
  0xd0   : > { %p2061_p6 = pnand %p2059_p1, %p2839_p8  ;;  %p2067_p5 = scmp.lt.s32.totalorder %s2065_s1, %s2058_s21 }
  0xd2   : > { %p2062_p9 = pneg %p2061_p6  ;;  %p2068_p13 = por %p2067_p5, %p2066_p0 }
  0xd4   : > { %p2069_p2 = pnand %p2068_p13, %p2062_p9 }
  0xd6   : > { %2072 = shalt.err (!%p2069_p2)
}
  0xd7   : > { %p2841_p7 = scmp.ne.s32.totalorder %s2831_s3, 0  ;;  %p2842_p10 = scmp.ne.s32.totalorder %s2817_s16, 0 }
  0xd8   : > { %s2531_s14 = sand.u32 (!%p2842_p10), 1, %s2151_s10   ;;  %p2843_p8 = scmp.ne.s32.totalorder (!%p2842_p10), %s2825_s17, 0 }
  0xd9   : > { %1757 = dma.hbm_to_vmem [thread:$0]  (!%p2841_p7), %s2484_s30, 64, %s407_s20, %s2399_s29  }
  0xda   : > { %415 = sbr.rel (%p2842_p10) target bundleno = 1743 (0x6cf), region = 56  ;;  %s2534_s22 = sshll.u32 (!%p2842_p10), %s2531_s14, 2 }
  0xdb   : > { %s418_s23 = scalar_lea.sflag (!%p2842_p10), [#allocation7], %s2531_s14  ;;  %s421_s19 = scalar_lea.vmem (!%p2842_p10), [#allocation6], %s2534_s22 }
  0xe1   : > { %2126 = dma.done.wait (%p2843_p8), %s418_s23, 64  }
  0xe2   : > { %2128 = vsyncadd (%p2843_p8), %s418_s23, 4294967232  ;;  %s426_s3 = sand.u32 1, %s2270_s15   ;;  %s430_s29 = scalar_lea.vmem [#allocation9], %s2534_s22 }
  0xe3   : > { %s427_s16 = scalar_lea.sflag [#allocation10], %s426_s3 }
  0xe4   : > { %2130 = dma.done.wait (%p2843_p8), %s427_s16, 128  }
  0xe5   : > { %2132 = vsyncadd (%p2843_p8), %s427_s16, 4294967168  ;;  %s439_s30 = scalar_lea.vmem [#allocation11], %s2534_s22  ;;  %p2844_p13 = scmp.eq.s32.totalorder %s2270_s15, 0 }
  0xe7   : > { %2134 = dma.done.wait (%p2844_p13), [#allocation13], 320   ;;  %p2845_p4 = pmov %p2844_p13 }
  0xe9   : > { %2136 = vsyncadd (%p2845_p4), [#allocation13], 4294966976  ;;  %p2846_p3 = pmov %p2845_p4 }
  0xeb   : > { %2138 = dma.done.wait (%p2846_p3), [#allocation16], 512   ;;  %p2847_p11 = pmov %p2846_p3 }
  0xec   : > { %v2178_v0 = vmov 0.0   ;;  %vm2179_vm0 = vmmov 0   ;;  %v1838_v1 = vld [vmem:[#allocation14] sm:$0xff]   ;;  %v1839_v2 = vld [vmem:[%s2778_s5] sm:$0xff]   ;;  %v1840_v3 = vld [vmem:[#allocation14 + $0x8] sm:$0xff]   ;;  %vm524_vm1 = vcmask 261120  }
  0xed   : > { %2140 = vsyncadd (%p2847_p11), [#allocation16], 4294966784  ;;  %1631 = vmatprep.subr.bf16.mxu0 %v2178_v0  ;;  %1639 = vmatprep.subr.bf16.mxu1 %v2178_v0  ;;  %v1841_v4 = vld [vmem:[%s2778_s5 + $0x8] sm:$0xff]   ;;  %v507_v5 = vld [vmem:[%s421_s19] sm:$0xf]  ;;  %vm580_vm2 = vcmask 64512  }
  0xee   : > { %1635 = vmatprep.mubr.msk.bf16.mxu0 %vm2179_vm0, %v2178_v0  ;;  %1643 = vmatprep.mubr.msk.bf16.mxu1 %vm2179_vm0, %v2178_v0  ;;  %v585_v6 = vld [vmem:[%s430_s29] sm:$0xf]  ;;  %581 = vst.msk [vmem:[#allocation5] sm:$0xff] %vm580_vm2, %v2178_v0  ;;  %582 = vst.msk [vmem:[#allocation5 + $0x8] sm:$0xff] %vm580_vm2, %v2178_v0  ;;  %vm569_vm3 = vcmask 257024   ;;  %s2180_s20 = smov 112  }
  0xef   : > { %1632 = vmatpush3.bf16.msra.mxu0 %v1838_v1  ;;  %1640 = vmatpush3.bf16.msra.mxu1 %v1839_v2  ;;  %583 = vst.msk [vmem:[#allocation5 + $0x10] sm:$0xff] %vm580_vm2, %v2178_v0  ;;  %584 = vst.msk [vmem:[#allocation5 + $0x18] sm:$0xff] %vm580_vm2, %v2178_v0  ;;  %s2181_s9 = smov 120   ;;  %s2182_s26 = smov 104   ;;  %v1843_v20 = vld [vmem:[#allocation15] sm:$0xff]   ;;  %v1844_v21 = vld [vmem:[#allocation15 + $0x8] sm:$0xff]  }
  0xf0   : > { %1633 = vmatprep.subr.bf16.mxu0 %v2178_v0  ;;  %1641 = vmatprep.subr.bf16.mxu1 %v2178_v0  ;;  %v647_v22 = vld [vmem:[%s439_s30] sm:$0xf]  ;;  %v709_v32 = vld [vmem:[#allocation12] sm:$0xf]  ;;  %vm571_vm4 = vcmask 7168   ;;  %v2183_v40 = vmov -inf  }
  0xf1   : > { %v710_v33 = vunpack.c.l.bf16 %v709_v32  ;;  %572 = vst.msk [vmem:[#allocation3] sm:$0xff] %vm571_vm4, %v2183_v40  ;;  %573 = vst.msk [vmem:[#allocation3 + $0x8] sm:$0xff] %vm571_vm4, %v2183_v40  ;;  %v2184_v41 = vmov 0   ;;  %vm787_vm5 = vcmask 1043456   ;;  %s2185_s8 = smov 8   ;;  %s2186_s24 = smov 16  }
  0xf2   : > { %574 = vst.msk [vmem:[#allocation3 + $0x10] sm:$0xff] %vm571_vm4, %v2183_v40  ;;  %575 = vst.msk [vmem:[#allocation3 + $0x18] sm:$0xff] %vm571_vm4, %v2183_v40  ;;  %1836 = vset.pattern.permute.xlu1 %v2184_v41  ;;  %1837 = vset.pattern.permute.xlu0 %v2184_v41  ;;  %s2187_s18 = smov 24   ;;  %vm1305_vm6 = vcmask 130048   ;;  %vm1308_vm7 = vcmask 195584   ;;  %s1576_s27 = sshll.u32 %s2531_s14, 3 }
  0xf3   : > { %1634 = vmatpush3.bf16.msra.mxu0 %v1840_v3  ;;  %1642 = vmatpush3.bf16.msra.mxu1 %v1841_v4  ;;  %576 = vst.msk [vmem:[#allocation4] sm:$0xff] %vm571_vm4, %v2178_v0  ;;  %577 = vst.msk [vmem:[#allocation4 + $0x8] sm:$0xff] %vm571_vm4, %v2178_v0  ;;  %s2848_s6 = sld [smem:[#allocation34_spill]]  ;;  %s2849_s1 = sld [smem:[#allocation28_spill]] }
  0xf4   : > { %1647 = vmatprep.subr.bf16.mxu0 %v2178_v0  ;;  %1655 = vmatprep.subr.bf16.mxu1 %v2178_v0  ;;  %578 = vst.msk [vmem:[#allocation4 + $0x10] sm:$0xff] %vm571_vm4, %v2178_v0  ;;  %579 = vst.msk [vmem:[#allocation4 + $0x18] sm:$0xff] %vm571_vm4, %v2178_v0  ;;  %s1600_s22 = sshll.u32 %s2159_s12, 7  ;;  %s499_s23 = scalar_lea.vmem [#allocation18], %s1576_s27 }
  0xf5   : > { %s1391_s19 = sshll.u32 %s499_s23, 4  ;;  %s2850_s29 = sld [smem:[#allocation35_spill]]  ;;  %s2725_s19 = int_to_ptr.vmem [resolvable:$true] %s1391_s19 }
  0xf6   : > { %1636 = vmatmul.mubr.msk.bf16.vlgmr.msra.gmra.mrb[0].mxu0 %vm524_vm1, %v507_v5  ;;  %1644 = vmatmul.mubr.msk.bf16.vlgmr.msra.gmra.mrb[0].mxu1 %vm524_vm1, %v585_v6  ;;  %s1378_s12 = scalar_lea.sflag [#allocation8], %s2531_s14  ;;  %s2073_s17 = scalar_lea.vmem %s2725_s19, 128 }
  0xf7   : > { %1651 = vmatprep.mubr.msk.bf16.mxu0 %vm2179_vm0, %v2178_v0  ;;  %1657 = vmatprep.mubr.msk.bf16.mxu1 %vm2179_vm0, %v2178_v0  ;;  %p2074_p12 = scmp.ne.s32.totalorder %s2725_s19, %s2073_s17  ;;  %s2188_s28 = smov [#allocation18]  }
  0xf8   : > { %1648 = vmatpush3.bf16.msra.mxu0 %v1843_v20  ;;  %v2648_v60 = vld [vmem:[#allocation3] sm:$0xff]  ;;  %s2077_s15 = sshll.u32 %s2188_s28, 4  ;;  %s2078_s15 = int_to_ptr.vmem [resolvable:$false] %s2077_s15 }
  0xf9   : > { %1649 = vmatprep.subr.bf16.mxu0 %v2178_v0  ;;  %p2851_p1 = scmp.ne.s32.totalorder %s2849_s1, 0  ;;  %s2079_s25 = scalar_lea.vmem %s2078_s15, 256 }
  0xfa   : > { %p2080_p0 = scmp.lt.s32.totalorder %s2725_s19, %s2078_s15  ;;  %p2081_p5 = scmp.lt.s32.totalorder %s2079_s25, %s2073_s17 }
  0xfb   : > { %s2723_s30 = scalar_lea.hbm %s2850_s29, %s1600_s22  ;;  %p2075_p6 = pnand %p2074_p12, %p2851_p1 }
  0xfc   : > { %1650 = vmatpush3.bf16.msra.mxu0 %v1844_v21  ;;  %p2082_p2 = por %p2081_p5, %p2080_p0 }
  0xfd   : > { %1661 = vmatprep.subr.bf16.mxu0 %v2178_v0  ;;  %p2076_p9 = pneg %p2075_p6 }
  0xff   : > { %1652 = vmatmul.mubr.msk.bf16.vlgmr.msra.gmra.mrb[4].mxu0 %vm524_vm1, %v647_v22  ;;  %p2083_p7 = pnand %p2082_p2, %p2076_p9 }
 0x100   : > { %1663 = vmatprep.mubr.msk.bf16.mxu0 %vm2179_vm0, %v2178_v0 }
 0x1c9   : > { %v562_v7 = vpop.f32.mrb[0].mxu0  ;;  %v640_v9 = vpop.f32.mrb[0].mxu1 }
 0x1ca   : > { %v568_v8 = vpack.c.bf16 %v562_v7, %v562_v7  ;;  %v1637_v10 = vpop.f32.mrb[1].mxu0  ;;  %v646_v11 = vpack.c.bf16 %v640_v9, %v640_v9  ;;  %v1645_v12 = vpop.f32.mrb[1].mxu1  ;;  %v895_v7 = vld [vmem:[#allocation3 + $0x8] sm:$0xff] }
 0x1cb   : > { %v565_v13 = vpop.f32.mrb[2].mxu0  ;;  %v643_v14 = vpop.f32.mrb[2].mxu1 }
 0x1cc   : > { %570 = vst.msk [vmem:[#allocation2] sm:$0xf] %vm569_vm3, %v568_v8  ;;  %v1638_v15 = vpop.f32.mrb[3].mxu0  ;;  %v1646_v16 = vpop.f32.mrb[3].mxu1  ;;  %982 = vrot.lane.b32.xlu1 %v646_v11, %s2180_s20  ;;  %846 = vrot.lane.b32.xlu0 %v646_v11, %s2181_s9  ;;  %v716_v17 = vsel %vm580_vm2, %v646_v11, 0 }
 0x1cd   : > { %1656 = vmatpush3.bf16.xpose.msra.mxu1 %v716_v17  ;;  %v1166_v16 = vld [vmem:[#allocation3 + $0x18] sm:$0xff] }
 0x1ce   : > { %1667 = vmatprep.subr.bf16.mxu1 %v2178_v0 }
 0x1d2   : > { %v701_v1 = vpop.f32.mrb[4].mxu0 }
 0x1d3   : > { %v708_v18 = vld [vmem:[#allocation2] sm:$0xf]  ;;  %v707_v2 = vpack.c.bf16 %v701_v1, %v701_v1  ;;  %v1653_v3 = vpop.f32.mrb[5].mxu0 }
 0x1d4   : > { %v1588_v19 = vcombine.low %v708_v18, %v708_v18  ;;  %1658 = vmatmul.mubr.msk.bf16.vlgmr.msra.gmra.mrb[4].mxu1 %vm580_vm2, %v708_v18  ;;  %v704_v4 = vpop.f32.mrb[6].mxu0 }
 0x1d5   : > { %1669 = vmatprep.mubr.msk.bf16.mxu1 %vm2179_vm0, %v2178_v0  ;;  %v789_v5 = vsel %vm787_vm5, %v707_v2, 0  ;;  %v1654_v6 = vpop.f32.mrb[7].mxu0  ;;  %v1033_v4 = vld [vmem:[#allocation4 + $0x10] sm:$0xff] }
 0x1d6   : > { %980 = vrot.lane.b32.xlu1 %v1588_v19, %s2180_s20  ;;  %843 = vrot.lane.b32.xlu0 %v1588_v19, %s2181_s9 }
 0x1d7   : > { %1662 = vmatpush3.bf16.msra.mxu0 %v789_v5 }
 0x1d8   : > { %1673 = vmatprep.subr.bf16.mxu0 %v2178_v0 }
 0x1da   : > { %1115 = vrot.lane.b32.xlu1 %v1588_v19, %s2182_s26  ;;  %1117 = vrot.lane.b32.xlu0 %v646_v11, %s2182_s26  ;;  %v2661_v11 = vld [vmem:[#allocation3 + $0x10] sm:$0xff] }
 0x23e   : > { %v847_v23 = vpop.permute.xlu0 %846  ;;  %v983_v25 = vpop.permute.xlu1 %982 }
 0x23f   : > { %v852_v24 = vsel %vm580_vm2, %v847_v23, 0  ;;  %v988_v27 = vsel %vm580_vm2, %v983_v25, 0 }
 0x240   : > { %1668 = vmatpush3.bf16.xpose.msra.mxu1 %v852_v24 }
 0x241   : > { %1679 = vmatprep.subr.bf16.mxu1 %v2178_v0 }
 0x248   : > { %v844_v26 = vpop.permute.xlu0 %843  ;;  %v981_v29 = vpop.permute.xlu1 %980 }
 0x249   : > { %1670 = vmatmul.mubr.msk.bf16.vlgmr.msra.gmra.mrb[8].mxu1 %vm580_vm2, %v844_v26 }
 0x24a   : > { %1680 = vmatpush3.bf16.xpose.msra.mxu1 %v988_v27  ;;  %1681 = vmatprep.mubr.msk.bf16.mxu1 %vm2179_vm0, %v2178_v0 }
 0x24b   : > { %1691 = vmatprep.subr.bf16.mxu1 %v2178_v0 }
 0x24c   : > { %v1118_v28 = vpop.permute.xlu0 %1117  ;;  %v1116_v31 = vpop.permute.xlu1 %1115 }
 0x24d   : > { %v1123_v30 = vsel %vm580_vm2, %v1118_v28, 0 }
 0x251   : > { %1682 = vmatmul.mubr.msk.bf16.vlgmr.msra.gmra.mrb[12].mxu1 %vm580_vm2, %v981_v29 }
 0x252   : > { %1692 = vmatpush3.bf16.xpose.msra.mxu1 %v1123_v30  ;;  %1693 = vmatprep.mubr.msk.bf16.mxu1 %vm2179_vm0, %v2178_v0 }
 0x253   : > { %1703 = vmatprep.subr.bf16.mxu1 %v2178_v0 }
 0x259   : > { %1694 = vmatmul.mubr.msk.bf16.vlgmr.msra.gmra.mrb[16].mxu1 %vm580_vm2, %v1116_v31 }
 0x25a   : > { %1707 = vmatprep.mubr.msk.bf16.mxu1 %vm2179_vm0, %v2178_v0 }
 0x2a7   : > { %v752_v34 = vpop.f32.mrb[4].mxu1 }
 0x2a8   : > { %v2620_v35 = vadd.f32 %v752_v34, %v710_v33  ;;  %v1659_v36 = vpop.f32.mrb[5].mxu1 }
 0x2a9   : > { %v755_v37 = vpop.f32.mrb[6].mxu1 }
 0x2aa   : > { %v1660_v38 = vpop.f32.mrb[7].mxu1  ;;  %v760_v39 = vsel %vm580_vm2, %v2620_v35, -inf }
 0x2ab   : > { %761 = vmax.xlane.f32.xlu0 %v760_v39 }
 0x31c   : > { %v888_v42 = vpop.f32.mrb[8].mxu1 }
 0x31d   : > { %v2636_v43 = vadd.f32 %v888_v42, %v710_v33  ;;  %v1671_v44 = vpop.f32.mrb[9].mxu1 }
 0x31e   : > { %v891_v45 = vpop.f32.mrb[10].mxu1 }
 0x31f   : > { %v1672_v46 = vpop.f32.mrb[11].mxu1  ;;  %v898_v47 = vsel %vm580_vm2, %v2636_v43, -inf }
 0x320   : > { %899 = vmax.xlane.f32.xlu1 %v898_v47 }
 0x324   : > { %v1024_v48 = vpop.f32.mrb[12].mxu1 }
 0x325   : > { %v2640_v49 = vadd.f32 %v1024_v48, %v710_v33  ;;  %v1683_v50 = vpop.f32.mrb[13].mxu1 }
 0x326   : > { %v1027_v51 = vpop.f32.mrb[14].mxu1 }
 0x327   : > { %v1684_v52 = vpop.f32.mrb[15].mxu1  ;;  %v1034_v53 = vsel %vm580_vm2, %v2640_v49, -inf }
 0x328   : > { %1035 = vmax.xlane.f32.xlu0 %v1034_v53 }
 0x32c   : > { %v1159_v54 = vpop.f32.mrb[16].mxu1 }
 0x32d   : > { %v2644_v55 = vadd.f32 %v1159_v54, %v710_v33  ;;  %v1695_v56 = vpop.f32.mrb[17].mxu1 }
 0x32e   : > { %v1162_v57 = vpop.f32.mrb[18].mxu1 }
 0x32f   : > { %v1696_v58 = vpop.f32.mrb[19].mxu1  ;;  %v1169_v59 = vsel %vm580_vm2, %v2644_v55, -inf }
 0x330   : > { %1170 = vmax.xlane.f32.xlu0 %v1169_v59  ;;  %v897_v59 = vld [vmem:[#allocation4 + $0x8] sm:$0xff] }
 0x338   : > { %v762_v61 = vpop.xlane.xlu0 %761 }
 0x339   : > { %v2651_v62 = vmax.f32 %v2648_v60, %v762_v61 }
 0x33b   : > { %v764_v63 = vsub.f32 %v2648_v60, %v2651_v62  ;;  %782 = vst.msk [vmem:[#allocation3] sm:$0xff] %vm571_vm4, %v2651_v62  ;;  %769 = vperm.xlu1 %1836, %v2651_v62  }
 0x33d   : > { %v765_v3 = vmul.f32 1.442695, %v764_v63 }
 0x3ad   : > { %v900_v8 = vpop.xlane.xlu1 %899 }
 0x3ae   : > { %v901_v9 = vmax.f32 %v895_v7, %v900_v8 }
 0x3b0   : > { %v902_v10 = vsub.f32 %v895_v7, %v901_v9  ;;  %919 = vst.msk [vmem:[#allocation3 + $0x8] sm:$0xff] %vm571_vm4, %v901_v9  ;;  %907 = vperm.xlu0 %1837, %v901_v9   ;;  %v1168_v9 = vld [vmem:[#allocation4 + $0x18] sm:$0xff] }
 0x3b2   : > { %v903_v46 = vmul.f32 1.442695, %v902_v10 }
 0x3b5   : > { %v1036_v12 = vpop.xlane.xlu0 %1035 }
 0x3b6   : > { %v2664_v13 = vmax.f32 %v2661_v11, %v1036_v12 }
 0x3b8   : > { %v1038_v14 = vsub.f32 %v2661_v11, %v2664_v13  ;;  %1055 = vst.msk [vmem:[#allocation3 + $0x10] sm:$0xff] %vm571_vm4, %v2664_v13  ;;  %1043 = vperm.xlu1 %1836, %v2664_v13   ;;  %v759_v13 = vld [vmem:[#allocation4] sm:$0xff] }
 0x3ba   : > { %v770_v15 = vpop.permute.xlu1 %769 }
 0x3bb   : > { %v772_v17 = vsub.f32 %v2620_v35, %v770_v15 }
 0x3bd   : > { %v1171_v18 = vpop.xlane.xlu0 %1170  ;;  %v773_v19 = vmul.f32 1.442695, %v772_v17 }
 0x3be   : > { %v1172_v20 = vmax.f32 %v1166_v16, %v1171_v18 }
 0x3bf   : > { %1847 = vpow2.f32 %v773_v19 }
 0x3c0   : > { %v1173_v21 = vsub.f32 %v1166_v16, %v1172_v20  ;;  %1190 = vst.msk [vmem:[#allocation3 + $0x18] sm:$0xff] %vm571_vm4, %v1172_v20  ;;  %1178 = vperm.xlu1 %1836, %v1172_v20  }
 0x3c2   : > { %v1174_v51 = vmul.f32 1.442695, %v1173_v21 }
 0x3c4   : > { %922 = vrot.lane.b32.xlu1 %v707_v2, %s2181_s9 }
 0x3c8   : > { %1057 = vrot.lane.b32.xlu1 %v707_v2, %s2180_s20 }
 0x3c9   : > { %v1848_v22 = vpop.eup %1847 }
 0x3ca   : > { %v783_v23 = vpack.c.bf16 %v1848_v22, %v1848_v22  ;;  %v776_v48 = vsel %vm580_vm2, %v1848_v22, 0.0  ;;  %v971_v22 = vld [vmem:[#allocation5 + $0x8] sm:$0xff] }
 0x3cc   : > { %1192 = vrot.lane.b32.xlu1 %v707_v2, %s2182_s26  ;;  %1664 = vmatmul.mubr.msk.bf16.vlgmr.msra.gmra.mrb[8].mxu0 %vm580_vm2, %v783_v23 }
 0x3cd   : > { %1675 = vmatprep.mubr.msk.bf16.mxu0 %vm2179_vm0, %v2178_v0 }
 0x42f   : > { %v908_v24 = vpop.permute.xlu0 %907 }
 0x430   : > { %v910_v25 = vsub.f32 %v2636_v43, %v908_v24 }
 0x432   : > { %v911_v26 = vmul.f32 1.442695, %v910_v25 }
 0x434   : > { %1849 = vpow2.f32 %v911_v26 }
 0x437   : > { %v1044_v27 = vpop.permute.xlu1 %1043 }
 0x438   : > { %v1046_v28 = vsub.f32 %v2640_v49, %v1044_v27  ;;  %v1039_v49 = vmul.f32 1.442695, %v1038_v14 }
 0x43a   : > { %v1047_v29 = vmul.f32 1.442695, %v1046_v28 }
 0x43c   : > { %1851 = vpow2.f32 %v1047_v29 }
 0x43e   : > { %v1850_v30 = vpop.eup %1849 }
 0x43f   : > { %v1179_v31 = vpop.permute.xlu1 %1178  ;;  %v914_v32 = vsel %vm580_vm2, %v1850_v30, 0.0  ;;  %v920_v38 = vpack.c.bf16 %v1850_v30, %v1850_v30  ;;  %v1106_v30 = vld [vmem:[#allocation5 + $0x10] sm:$0xff] }
 0x440   : > { %v1181_v33 = vsub.f32 %v2644_v55, %v1179_v31  ;;  %915 = vadd.xlane.f32.xlu1 %v914_v32 }
 0x442   : > { %v1182_v34 = vmul.f32 1.442695, %v1181_v33 }
 0x443   : > { %v923_v35 = vpop.permute.xlu1 %922 }
 0x444   : > { %1853 = vpow2.f32 %v1182_v34  ;;  %v928_v36 = vsel %vm787_vm5, %v923_v35, 0 }
 0x445   : > { %1674 = vmatpush3.bf16.msra.mxu0 %v928_v36  ;;  %1855 = vpow2.f32 %v903_v46 }
 0x446   : > { %v1852_v37 = vpop.eup %1851  ;;  %1685 = vmatprep.subr.bf16.mxu0 %v2178_v0  ;;  %1857 = vpow2.f32 %v1039_v49 }
 0x447   : > { %v1050_v39 = vsel %vm580_vm2, %v1852_v37, 0.0  ;;  %v1058_v40 = vpop.permute.xlu1 %1057  ;;  %v1056_v44 = vpack.c.bf16 %v1852_v37, %v1852_v37  ;;  %1859 = vpow2.f32 %v1174_v51 }
 0x448   : > { %1051 = vadd.xlane.f32.xlu0 %v1050_v39  ;;  %1676 = vmatmul.mubr.msk.bf16.vlgmr.msra.gmra.mrb[12].mxu0 %vm580_vm2, %v920_v38  ;;  %v1063_v41 = vsel %vm787_vm5, %v1058_v40, 0  ;;  %1861 = vpow2.f32 %v765_v3  ;;  %v1241_v38 = vld [vmem:[#allocation5 + $0x18] sm:$0xff] }
 0x449   : > { %1686 = vmatpush3.bf16.msra.mxu0 %v1063_v41  ;;  %1687 = vmatprep.mubr.msk.bf16.mxu0 %vm2179_vm0, %v2178_v0 }
 0x44a   : > { %1697 = vmatprep.subr.bf16.mxu0 %v2178_v0 }
 0x44b   : > { %v1193_v42 = vpop.permute.xlu1 %1192 }
 0x44c   : > { %v1198_v45 = vsel %vm787_vm5, %v1193_v42, 0 }
 0x44e   : > { %v1854_v43 = vpop.eup %1853 }
 0x44f   : > { %v1185_v47 = vsel %vm580_vm2, %v1854_v43, 0.0  ;;  %v1191_v50 = vpack.c.bf16 %v1854_v43, %v1854_v43  ;;  %v1856_v52 = vpop.eup %1855 }
 0x450   : > { %1186 = vadd.xlane.f32.xlu1 %v1185_v47  ;;  %1688 = vmatmul.mubr.msk.bf16.vlgmr.msra.gmra.mrb[16].mxu0 %vm580_vm2, %v1056_v44  ;;  %v1858_v53 = vpop.eup %1857  ;;  %v913_v61 = vmul.f32 %v1856_v52, %v897_v59 }
 0x451   : > { %1698 = vmatpush3.bf16.msra.mxu0 %v1198_v45  ;;  %1699 = vmatprep.mubr.msk.bf16.mxu0 %vm2179_vm0, %v2178_v0  ;;  %v1860_v54 = vpop.eup %1859  ;;  %v1049_v5 = vmul.f32 %v1858_v53, %v1033_v4 }
 0x452   : > { %v1184_v10 = vmul.f32 %v1860_v54, %v1168_v9  ;;  %v1862_v11 = vpop.eup %1861 }
 0x453   : > { %v775_v60 = vmul.f32 %v1862_v11, %v759_v13  ;;  %v1595_v13 = vld [vmem:[%s2848_s6] ss:$0 sm:$0xff] }
 0x454   : > { %777 = vadd.xlane.f32.xlu1 %v776_v48  ;;  %v1845_v48 = vld [vmem:[#allocation17] sm:$0xff]  }
 0x455   : > { %1704 = vmatpush3.bf16.msra.mxu1 %v1845_v48 }
 0x456   : > { %1705 = vmatprep.subr.bf16.mxu1 %v2178_v0 }
 0x458   : > { %1700 = vmatmul.mubr.msk.bf16.vlgmr.msra.gmra.mrb[20].mxu0 %vm580_vm2, %v1191_v50  ;;  %v1846_v50 = vld [vmem:[#allocation17 + $0x8] sm:$0xff]  }
 0x459   : > { %1706 = vmatpush3.bf16.msra.mxu1 %v1846_v50 }
 0x45e   : > { %974 = vperm.xlu0 %1837, %v1856_v52  }
 0x465   : > { %1109 = vperm.xlu1 %1836, %v1858_v53  }
 0x469   : > { %1244 = vperm.xlu1 %1836, %v1860_v54  }
 0x49f   : > { %v2698_v55 = vpop.f32.mrb[8].mxu0 }
 0x4a0   : > { %v1665_v56 = vpop.f32.mrb[9].mxu0 }
 0x4a1   : > { %v828_v57 = vpop.f32.mrb[10].mxu0  ;;  %v831_v56 = vld [vmem:[#allocation5] sm:$0xff] }
 0x4a2   : > { %v1666_v58 = vpop.f32.mrb[11].mxu0 }
 0x4cd   : > { %v916_v1 = vpop.xlane.xlu1 %915 }
 0x4ce   : > { %v917_v2 = vadd.f32 %v916_v1, %v913_v61 }
 0x4d0   : > { %918 = vst.msk [vmem:[#allocation4 + $0x8] sm:$0xff] %vm571_vm4, %v917_v2 }
 0x4d5   : > { %v1052_v6 = vpop.xlane.xlu0 %1051 }
 0x4d6   : > { %v1053_v7 = vadd.f32 %v1052_v6, %v1049_v5 }
 0x4d7   : > { %v1263_v8 = vld [vmem:[#allocation4 + $0x8] sm:$0xff] }
 0x4d8   : > { %1054 = vst.msk [vmem:[#allocation4 + $0x10] sm:$0xff] %vm571_vm4, %v1053_v7  ;;  %1863 = vrcp.f32 %v1263_v8 }
 0x4dd   : > { %v1187_v12 = vpop.xlane.xlu1 %1186  ;;  %v975_v23 = vpop.permute.xlu0 %974 }
 0x4de   : > { %v1188_v14 = vadd.f32 %v1187_v12, %v1184_v10  ;;  %v977_v24 = vmul.f32 %v975_v23, %v971_v22 }
 0x4df   : > { %v1273_v15 = vld [vmem:[#allocation4 + $0x10] sm:$0xff] }
 0x4e0   : > { %1189 = vst.msk [vmem:[#allocation4 + $0x18] sm:$0xff] %vm571_vm4, %v1188_v14  ;;  %1865 = vrcp.f32 %v1273_v15 }
 0x4e1   : > { %v778_v62 = vpop.xlane.xlu1 %777 }
 0x4e2   : > { %v1864_v63 = vpop.eup %1863  ;;  %v779_v16 = vadd.f32 %v778_v62, %v775_v60 }
 0x4e3   : > { %1268 = vperm.xlu0 %1837, %v1864_v63  }
 0x4e4   : > { %781 = vst.msk [vmem:[#allocation4] sm:$0xff] %vm571_vm4, %v779_v16 }
 0x4e5   : > { %v1110_v31 = vpop.permute.xlu1 %1109 }
 0x4e6   : > { %v1112_v32 = vmul.f32 %v1110_v31, %v1106_v30 }
 0x4e7   : > { %v1283_v17 = vld [vmem:[#allocation4 + $0x18] sm:$0xff] }
 0x4e8   : > { %1867 = vrcp.f32 %v1283_v17 }
 0x4e9   : > { %v1245_v39 = vpop.permute.xlu1 %1244 }
 0x4ea   : > { %v1866_v18 = vpop.eup %1865  ;;  %v1247_v40 = vmul.f32 %v1245_v39, %v1241_v38 }
 0x4eb   : > { %1278 = vperm.xlu1 %1836, %v1866_v18   ;;  %v1253_v19 = vld [vmem:[#allocation4] sm:$0xff] }
 0x4ec   : > { %1869 = vrcp.f32 %v1253_v19 }
 0x4ef   : > { %834 = vperm.xlu1 %1836, %v1862_v11  }
 0x4f2   : > { %v1868_v20 = vpop.eup %1867 }
 0x4f3   : > { %1288 = vperm.xlu0 %1837, %v1868_v20  }
 0x4f6   : > { %v1870_v21 = vpop.eup %1869 }
 0x4f7   : > { %1258 = vperm.xlu0 %1837, %v1870_v21  }
 0x51b   : > { %v964_v25 = vpop.f32.mrb[12].mxu0 }
 0x51c   : > { %v978_v26 = vadd.f32 %v977_v24, %v964_v25  ;;  %v1677_v27 = vpop.f32.mrb[13].mxu0 }
 0x51d   : > { %v967_v28 = vpop.f32.mrb[14].mxu0 }
 0x51e   : > { %979 = vst.msk [vmem:[#allocation5 + $0x8] sm:$0xff] %vm580_vm2, %v978_v26  ;;  %v1678_v29 = vpop.f32.mrb[15].mxu0 }
 0x523   : > { %v1099_v33 = vpop.f32.mrb[16].mxu0 }
 0x524   : > { %v1113_v34 = vadd.f32 %v1112_v32, %v1099_v33  ;;  %v1689_v35 = vpop.f32.mrb[17].mxu0 }
 0x525   : > { %v1102_v36 = vpop.f32.mrb[18].mxu0  ;;  %v1265_v47 = vld [vmem:[#allocation5 + $0x8] sm:$0xff] }
 0x526   : > { %1114 = vst.msk [vmem:[#allocation5 + $0x10] sm:$0xff] %vm580_vm2, %v1113_v34  ;;  %v1690_v37 = vpop.f32.mrb[19].mxu0 }
 0x52b   : > { %v1234_v41 = vpop.f32.mrb[20].mxu0 }
 0x52c   : > { %v1248_v42 = vadd.f32 %v1247_v40, %v1234_v41  ;;  %v1701_v43 = vpop.f32.mrb[21].mxu0 }
 0x52d   : > { %v1237_v44 = vpop.f32.mrb[22].mxu0  ;;  %v1275_v53 = vld [vmem:[#allocation5 + $0x10] sm:$0xff] }
 0x52e   : > { %1249 = vst.msk [vmem:[#allocation5 + $0x18] sm:$0xff] %vm580_vm2, %v1248_v42  ;;  %v1702_v45 = vpop.f32.mrb[23].mxu0 }
 0x535   : > { %v1285_v2 = vld [vmem:[#allocation5 + $0x18] sm:$0xff] }
 0x562   : > { %v1269_v46 = vpop.permute.xlu0 %1268 }
 0x563   : > { %v1271_v49 = vmul.f32 %v1269_v46, %v1265_v47 }
 0x565   : > { %v1272_v51 = vpack.c.bf16 %v1271_v49, %v1271_v49 }
 0x567   : > { %1294 = vrot.lane.b32.xlu1 %v1272_v51, %s2185_s8 }
 0x56a   : > { %v1279_v52 = vpop.permute.xlu1 %1278 }
 0x56b   : > { %v1281_v54 = vmul.f32 %v1279_v52, %v1275_v53 }
 0x56d   : > { %v1282_v57 = vpack.c.bf16 %v1281_v54, %v1281_v54 }
 0x56e   : > { %v835_v58 = vpop.permute.xlu1 %834 }
 0x56f   : > { %v837_v59 = vmul.f32 %v835_v58, %v831_v56  ;;  %1297 = vrot.lane.b32.xlu0 %v1282_v57, %s2186_s24 }
 0x571   : > { %v838_v61 = vadd.f32 %v837_v59, %v2698_v55 }
 0x572   : > { %v1289_v1 = vpop.permute.xlu0 %1288 }
 0x573   : > { %839 = vst.msk [vmem:[#allocation5] sm:$0xff] %vm580_vm2, %v838_v61  ;;  %v1291_v3 = vmul.f32 %v1289_v1, %v1285_v2 }
 0x575   : > { %v1292_v0 = vpack.c.bf16 %v1291_v3, %v1291_v3 }
 0x576   : > { %v1259_v5 = vpop.permute.xlu0 %1258 }
 0x577   : > { %1300 = vrot.lane.b32.xlu1 %v1292_v0, %s2187_s18 }
 0x57a   : > { %v1255_v4 = vld [vmem:[#allocation5] sm:$0xff] }
 0x57b   : > { %v1261_v6 = vmul.f32 %v1259_v5, %v1255_v4 }
 0x57d   : > { %v1262_v8 = vpack.c.bf16 %v1261_v6, %v1261_v6 }
 0x5d9   : > { %v1295_v7 = vpop.permute.xlu1 %1294 }
 0x5da   : > { %v1304_v55 = vsel %vm580_vm2, %v1262_v8, %v1295_v7 }
 0x5e1   : > { %v1298_v9 = vpop.permute.xlu0 %1297 }
 0x5e2   : > { %v1307_v10 = vsel %vm1305_vm6, %v1304_v55, %v1298_v9 }
 0x5e9   : > { %v1301_v11 = vpop.permute.xlu1 %1300 }
 0x5ea   : > { %v1310_v12 = vsel %vm1308_vm7, %v1307_v10, %v1301_v11 }
 0x5eb   : > { %1708 = vmatmul.mubr.msk.bf16.vlgmr.msra.gmra.mrb[20].mxu1 %vm524_vm1, %v1310_v12 }
 0x6be   : > { %v1370_v14 = vpop.f32.mrb[20].mxu1 }
 0x6bf   : > { %v1371_v15 = vadd.f32 %v1595_v13, %v1370_v14  ;;  %v1709_v60 = vpop.f32.mrb[21].mxu1 }
 0x6c0   : > { %v1373_v62 = vpop.f32.mrb[22].mxu1 }
 0x6c1   : > { %v1710_v63 = vpop.f32.mrb[23].mxu1  ;;  %1376 = vst.msk [vmem:[%s499_s23] sm:$0xff] %vm524_vm1, %v1371_v15 }
 0x6c2   : > { %2086 = shalt.err (!%p2083_p7)
}
 0x6c3   : > { %s2087_s14 = scalar_lea.hbm %s2723_s30, 128  ;;  %s2091_s26 = scalar_lea.hbm %s2850_s29, 256 }
 0x6c4   : > { %p2088_p10 = scmp.ne.s32.totalorder %s2723_s30, %s2087_s14  ;;  %p2092_p4 = scmp.lt.u32.totalorder %s2723_s30, %s2850_s29 }
 0x6c5   : > { %p2093_p3 = scmp.lt.u32.totalorder %s2091_s26, %s2087_s14  ;;  %p2095_p12 = scmp.lt.u32.totalorder %s2087_s14, %s2723_s30 }
 0x6c6   : > { %p2089_p8 = pnand %p2088_p10, %p2851_p1 }
 0x6c7   : > { %p2094_p11 = por %p2093_p3, %p2092_p4 }
 0x6c8   : > { %p2090_p13 = pneg %p2089_p8 }
 0x6c9   : > { %p2096_p6 = por %p2095_p12, %p2094_p11 }
 0x6cb   : > { %p2097_p9 = pnand %p2096_p6, %p2090_p13 }
 0x6cd   : > { %2100 = shalt.err (!%p2097_p9)
}
 0x6ce   : > { %1733 = dma.vmem_to_hbm [thread:$0]  (%p2851_p1), %s2725_s19, 128, %s2723_s30, %s1378_s12  }
 0x6cf PF: > { %s2852_s18 = sld [smem:[#allocation24_spill]]  ;;  %s2853_s27 = sld [smem:[#allocation30_spill]] }
 0x6d0   : > { %s2854_s21 = sld [smem:[#allocation26_spill]] }
 0x6d5   : > { %s1403_s13 = sand.u32 1, %s2852_s18   ;;  %p2855_p0 = scmp.ne.s32.totalorder %s2853_s27, 0 }
 0x6d6   : > { %p2856_p5 = scmp.ge.s32.totalorder %s2854_s21, 2  ;;  %s1404_s6 = scalar_lea.sflag [#allocation8], %s1403_s13 }
 0x6d8   : > { %p1759_p2 = pnand %p2856_p5, %p2855_p0 }
 0x6da   : > { %2142 = dma.done.wait (!%p1759_p2), %s1404_s6, 128  }
 0x6db   : > { %2144 = vsyncadd (!%p1759_p2), %s1404_s6, 4294967168  ;;  %s30_s14 = sadd.s32 1, %s2854_s21   ;;  %s2857_s1 = sld [smem:[#allocation29_spill]] }
 0x6dc   : > { %p27_p7 = scmp.ge.s32.totalorder %s30_s14, 4   ;;  %s2858_s12 = sld [smem:[#allocation25_spill]] }
 0x6dd   : > { %s2859_s13 = sld [smem:[#allocation27_spill]]  ;;  %s2860_s30 = smov %s2151_s10 }
 0x6de   : > { %s2861_s10 = smov %s2155_s11  ;;  %29 = sbr.rel (!%p27_p7) target bundleno = 16 (0x10), region = 159 }
 0x6e1   : > { %s2862_s11 = smov %s2857_s1 }
 0x6e5   :  { %1409 = vsyncpa [#allocation7], 1 }
 0x6e6   :  { %1411 = vsyncpa [#allocation7 + $0x1], 1 }
 0x6e7   :  { %1412 = vsyncpa [#allocation10], 1 }
 0x6e8   :  { %1414 = vsyncpa [#allocation10 + $0x1], 1 }
 0x6e9   :  { %1415 = vsyncpa [#allocation13], 1 }
 0x6ea   :  { %1416 = vsyncpa [#allocation16], 1 }
 0x6eb   :  { %1417 = vsyncpa [#allocation8], 1 }
 0x6ec   :  { %1419 = vsyncpa [#allocation8 + $0x1], 1 }

</bundles_post_ra>
